<compile_context>
chip_gen: v5e
topology: v5e:2x2
jax: 0.10.0
libtpu: 0.0.40
codegen_flags: <defaults>
</compile_context>

<pallas_src>
import functools

import jax
import jax.numpy as jnp
from jax.experimental import pallas as pl
from jax.experimental.pallas import tpu as pltpu

N_CLASS = 10          # stand-in for config.n_class
BN_EPS = 1e-5

# VGG19 'E' configuration: 16 conv layers.
VGG19_CFG = [64, 64, "M", 128, 128, "M", 256, 256, 256, 256, "M",
             512, 512, 512, 512, "M", 512, 512, 512, 512, "M"]


# --------------------------------------------------------------------------
# Kernel 1: fused 3x3 conv (padding=1) + BN(inference) + ReLU
# --------------------------------------------------------------------------
def _conv3x3_bn_relu_kernel(x_ref, w_ref, s_ref, b_ref, o_ref, *, tile_h, wp):
    # x_ref: (1, (H+3)*Wp, Cin) f32  -- whole zero-padded image, rows flattened
    # w_ref: (9, Cin, Cout) bf16     -- the 3x3 taps
    # s_ref, b_ref: (1, Cout) f32    -- folded BN scale / shift
    # o_ref: (1, tile_h*Wp, Cout) f32 -- tile_h output rows on the padded-width grid
    tile_m = tile_h * wp
    cout = o_ref.shape[2]
    row0 = pl.program_id(1) * tile_m
    acc = jnp.zeros((tile_m, cout), jnp.float32)
    for kh in range(3):
        for kw in range(3):
            # Output flat index m (row-major on the padded-width grid) needs
            # input flat index row0 + kh*Wp + kw + m  -> one contiguous slice.
            win = x_ref[0, pl.ds(row0 + kh * wp + kw, tile_m), :]
            acc = acc + jnp.dot(win.astype(jnp.bfloat16), w_ref[kh * 3 + kw],
                                preferred_element_type=jnp.float32)
    y = acc * s_ref[...] + b_ref[...]                          # BN affine (f32)
    o_ref[0] = jnp.maximum(y, 0.0)                             # ReLU


def _pick_tile_h(H, Wp, Cout):
    # Largest divisor of H whose (tile_h*Wp, Cout) f32 accumulator stays around
    # <=32 vregs, with tile_h*Wp a multiple of 8 (or the full extent) so the
    # output BlockSpec stays legal.
    lane_tiles = -(-Cout // 128)
    budget = max(Wp, 256 // lane_tiles)
    legal = [c for c in range(1, H + 1)
             if H % c == 0 and (c == H or (c * Wp) % 8 == 0)]
    within = [c for c in legal if c * Wp <= budget]
    return max(within) if within else min(legal)


def conv3x3_bn_relu(x, w, scale, shift):
    # x: (N, H, W, Cin) f32 NHWC; w: (3, 3, Cin, Cout) bf16; scale/shift: (Cout,) f32
    N, H, W, Cin = x.shape
    Cout = w.shape[-1]
    Wp = W + 2
    # Zero "same" padding; one extra bottom row keeps the flattened kh=2 window
    # of the last row tile in bounds.
    xp = jnp.pad(x, ((0, 0), (1, 2), (1, 1), (0, 0)))          # (N, H+3, Wp, Cin)
    xf = xp.reshape(N, (H + 3) * Wp, Cin)
    wf = w.reshape(9, Cin, Cout)
    tile_h = _pick_tile_h(H, Wp, Cout)
    tile_m = tile_h * Wp
    n_tiles = H // tile_h
    out = pl.pallas_call(
        functools.partial(_conv3x3_bn_relu_kernel, tile_h=tile_h, wp=Wp),
        out_shape=jax.ShapeDtypeStruct((N, H * Wp, Cout), jnp.float32),
        grid=(N, n_tiles),
        in_specs=[
            # Whole flattened image stays resident in VMEM across the row tiles.
            pl.BlockSpec((1, (H + 3) * Wp, Cin), lambda n, t: (n, 0, 0)),
            pl.BlockSpec((9, Cin, Cout), lambda n, t: (0, 0, 0)),
            pl.BlockSpec((1, Cout), lambda n, t: (0, 0)),
            pl.BlockSpec((1, Cout), lambda n, t: (0, 0)),
        ],
        out_specs=pl.BlockSpec((1, tile_m, Cout), lambda n, t: (n, t, 0)),
        compiler_params=pltpu.CompilerParams(
            dimension_semantics=("parallel", "parallel"),      # batch + row tiles
            vmem_limit_bytes=32 * 1024 * 1024),
    )(xf, wf, scale.reshape(1, Cout), shift.reshape(1, Cout))
    # Drop the two padded-width garbage columns of each output row.
    return out.reshape(N, H, Wp, Cout)[:, :, :W, :]


# --------------------------------------------------------------------------
# Kernel 2: MaxPool2d(kernel_size=2, stride=2)
# --------------------------------------------------------------------------
def _maxpool2x2_kernel(x_ref, o_ref):
    # x_ref: (1, H, Wo, 2*C) -- adjacent width pairs folded onto the lane axis
    # o_ref: (1, Ho, Wo, C)
    ho, c = o_ref.shape[1], o_ref.shape[3]
    for i in range(ho):
        top = jnp.maximum(x_ref[0, 2 * i, :, pl.ds(0, c)],
                          x_ref[0, 2 * i, :, pl.ds(c, c)])
        bot = jnp.maximum(x_ref[0, 2 * i + 1, :, pl.ds(0, c)],
                          x_ref[0, 2 * i + 1, :, pl.ds(c, c)])
        o_ref[0, i] = jnp.maximum(top, bot)


def maxpool2x2(x):
    N, H, W, C = x.shape
    Ho, Wo = H // 2, W // 2
    # Free (contiguous) reshape: width pairs become the two lane halves, so the
    # kernel is a plain VPU max — no strided loads, no selector matmuls.
    x2 = x.reshape(N, H, Wo, 2 * C)
    return pl.pallas_call(
        _maxpool2x2_kernel,
        out_shape=jax.ShapeDtypeStruct((N, Ho, Wo, C), x.dtype),
        grid=(N,),
        in_specs=[pl.BlockSpec((1, H, Wo, 2 * C), lambda n: (n, 0, 0, 0))],
        out_specs=pl.BlockSpec((1, Ho, Wo, C), lambda n: (n, 0, 0, 0)),
        compiler_params=pltpu.CompilerParams(
            dimension_semantics=("parallel",)),
    )(x2)


# --------------------------------------------------------------------------
# Kernel 3: Linear (+bias, optional ReLU), tiled over (N_out, K), bf16 MXU
# --------------------------------------------------------------------------
def _linear_kernel(x_ref, w_ref, b_ref, o_ref, acc_ref, *, apply_relu):
    k = pl.program_id(1)

    @pl.when(k == 0)
    def _():
        acc_ref[...] = jnp.zeros_like(acc_ref)

    acc_ref[...] += jnp.dot(x_ref[...], w_ref[...],
                            preferred_element_type=jnp.float32)

    @pl.when(k == pl.num_programs(1) - 1)
    def _():
        y = acc_ref[...] + b_ref[...]
        if apply_relu:
            y = jnp.maximum(y, 0.0)
        o_ref[...] = y.astype(o_ref.dtype)


def _largest_tile(dim, cap):
    # Largest multiple of 128 that divides `dim` and is <= cap (fallback: dim).
    best = None
    t = 128
    while t <= min(dim, cap):
        if dim % t == 0:
            best = t
        t += 128
    return best if best is not None else dim


def linear(x, w, b, *, relu, out_dtype=jnp.bfloat16):
    # x: (M, K) bf16; w: (K, Nf) bf16; b: (Nf,) f32
    M, K = x.shape
    Nf = w.shape[1]
    # Lane-align the output features (e.g. the 10-class head) so stores stay
    # dense; padding is sliced off afterwards.
    Np = -(-Nf // 128) * 128
    if Np != Nf:
        w = jnp.pad(w, ((0, 0), (0, Np - Nf)))
        b = jnp.pad(b, ((0, Np - Nf),))
    tk = _largest_tile(K, 2048)
    tn = _largest_tile(Np, 2048)
    out = pl.pallas_call(
        functools.partial(_linear_kernel, apply_relu=relu),
        out_shape=jax.ShapeDtypeStruct((M, Np), out_dtype),
        grid=(Np // tn, K // tk),
        in_specs=[
            pl.BlockSpec((M, tk), lambda j, k: (0, k)),
            pl.BlockSpec((tk, tn), lambda j, k: (k, j)),
            pl.BlockSpec((1, tn), lambda j, k: (0, j)),
        ],
        out_specs=pl.BlockSpec((M, tn), lambda j, k: (0, j)),
        scratch_shapes=[pltpu.VMEM((M, tn), jnp.float32)],
        compiler_params=pltpu.CompilerParams(
            dimension_semantics=("parallel", "arbitrary"),
            vmem_limit_bytes=32 * 1024 * 1024),
    )(x, w, b.reshape(1, Np))
    return out if Np == Nf else out[:, :Nf]


# --------------------------------------------------------------------------
# Glue: AdaptiveAvgPool2d((7, 7)) — exact PyTorch bin math, negligible compute
# --------------------------------------------------------------------------
def adaptive_avg_pool_nhwc(x, out_hw=(7, 7)):
    N, H, W, C = x.shape
    OH, OW = out_hw
    x = x.astype(jnp.float32)
    rows = []
    for i in range(OH):
        h0, h1 = (i * H) // OH, -(-((i + 1) * H) // OH)
        cols = []
        for j in range(OW):
            w0, w1 = (j * W) // OW, -(-((j + 1) * W) // OW)
            cols.append(jnp.mean(x[:, h0:h1, w0:w1, :], axis=(1, 2)))
        rows.append(jnp.stack(cols, axis=1))
    return jnp.stack(rows, axis=1)                             # (N, OH, OW, C)


# --------------------------------------------------------------------------
# Parameter init (deterministic, synthetic) and forward
# --------------------------------------------------------------------------
def init_params(key, n_per_unit, n_class):
    features = []
    cin = n_per_unit
    for v in VGG19_CFG:
        if v == "M":
            features.append({"type": "pool"})
            continue
        key, k1, k2, k3, k4, k5, k6 = jax.random.split(key, 7)
        w = jax.random.normal(k1, (3, 3, cin, v), jnp.float32) * jnp.sqrt(2.0 / (9 * cin))
        conv_b = 0.01 * jax.random.normal(k2, (v,), jnp.float32)
        gamma = 1.0 + 0.1 * jax.random.normal(k3, (v,), jnp.float32)
        beta = 0.1 * jax.random.normal(k4, (v,), jnp.float32)
        r_mean = 0.1 * jax.random.normal(k5, (v,), jnp.float32)
        r_var = 0.9 + 0.2 * jax.random.uniform(k6, (v,), jnp.float32)
        # Fold conv bias + inference BN into a per-channel scale/shift applied in-kernel.
        scale = gamma / jnp.sqrt(r_var + BN_EPS)
        shift = beta + (conv_b - r_mean) * scale
        features.append({"type": "conv", "w": w.astype(jnp.bfloat16),
                         "scale": scale, "shift": shift})
        cin = v
    key, k1, k2, k3, k4, k5, k6 = jax.random.split(key, 7)
    return {
        "features": features,
        "fc1_w": (jax.random.normal(k1, (512 * 7 * 7, 4096), jnp.float32)
                  * jnp.sqrt(2.0 / (512 * 49))).astype(jnp.bfloat16),
        "fc1_b": 0.01 * jax.random.normal(k2, (4096,), jnp.float32),
        "fc2_w": (jax.random.normal(k3, (4096, 4096), jnp.float32)
                  * jnp.sqrt(2.0 / 4096)).astype(jnp.bfloat16),
        "fc2_b": 0.01 * jax.random.normal(k4, (4096,), jnp.float32),
        "fc3_w": (jax.random.normal(k5, (4096, n_class), jnp.float32)
                  * jnp.sqrt(1.0 / 4096)).astype(jnp.bfloat16),
        "fc3_b": 0.01 * jax.random.normal(k6, (n_class,), jnp.float32),
    }


def vgg19_bn_forward(x_nchw, params):
    # layout: input is NCHW (PyTorch); kernels run in NHWC; we convert back to
    # NCHW before flattening so the classifier sees torch.flatten(x, 1) ordering.
    x = jnp.transpose(x_nchw, (0, 2, 3, 1)).astype(jnp.float32)
    for layer in params["features"]:
        if layer["type"] == "conv":
            x = conv3x3_bn_relu(x, layer["w"], layer["scale"], layer["shift"])
        else:
            x = maxpool2x2(x)
    x = adaptive_avg_pool_nhwc(x, (7, 7))
    x = jnp.transpose(x, (0, 3, 1, 2)).reshape(x.shape[0], -1)   # torch.flatten(x, 1)
    x = x.astype(jnp.bfloat16)                                   # bf16 classifier path
    x = linear(x, params["fc1_w"], params["fc1_b"], relu=True)   # Linear + ReLU (+Dropout=id)
    x = linear(x, params["fc2_w"], params["fc2_b"], relu=True)   # Linear + ReLU (+Dropout=id)
    x = linear(x, params["fc3_w"], params["fc3_b"], relu=False,
               out_dtype=jnp.float32)                            # final Linear -> n_class
    return x


if __name__ == "__main__":
    key = jax.random.PRNGKey(0)
    k_params, k_x = jax.random.split(key)
    n_per_unit = 4
    params = init_params(k_params, n_per_unit, N_CLASS)
    # Small input: batch=2, channels=n_per_unit=4, spatial=32 (smallest spatial
    # that survives VGG19's five 2x2 maxpools).
    x = jax.random.normal(k_x, (2, n_per_unit, 32, 32), jnp.float32)
    out = vgg19_bn_forward(x, params)
    out = jax.block_until_ready(out)
    assert out.shape == (2, N_CLASS), out.shape
    assert bool(jnp.all(jnp.isfinite(out))), "non-finite output"
    print("KERNEL_OK")
</pallas_src>

<mosaic_0001>
module attributes {stable_mosaic.version = 11 : i64} {
  func.func @_conv3x3_bn_relu_kernel(%arg0: i32, %arg1: i32, %arg2: memref<1x1190x4xf32, #tpu.memory_space<vmem>>, %arg3: memref<9x4x64xbf16, #tpu.memory_space<vmem>>, %arg4: memref<1x64xf32, #tpu.memory_space<vmem>>, %arg5: memref<1x64xf32, #tpu.memory_space<vmem>>, %arg6: memref<1x136x64xf32, #tpu.memory_space<vmem>>) attributes {dimension_semantics = [#tpu.dimension_semantics<parallel>, #tpu.dimension_semantics<parallel>], iteration_bounds = array<i64: 2, 8>, scalar_prefetch = 0 : i64, scratch_operands = 0 : i64, tpu.core_type = #tpu.core_type<tc>, window_params = [{transform_indices = @transform_0, window_bounds = array<i64: 1, 1190, 4>}, {pipeline_mode = #tpu.pipeline_mode<synchronous>, transform_indices = @transform_1, window_bounds = array<i64: 9, 4, 64>}, {pipeline_mode = #tpu.pipeline_mode<synchronous>, transform_indices = @transform_2, window_bounds = array<i64: 1, 64>}, {pipeline_mode = #tpu.pipeline_mode<synchronous>, transform_indices = @transform_3, window_bounds = array<i64: 1, 64>}, {transform_indices = @transform_4, window_bounds = array<i64: 1, 136, 64>}]} {
    %c136_i32 = arith.constant 136 : i32
    %0 = arith.muli %arg1, %c136_i32 : i32
    %cst = arith.constant 0.000000e+00 : f32
    %1 = vector.broadcast %cst : f32 to vector<136x64xf32>
    %c0_i32 = arith.constant 0 : i32
    %2 = arith.addi %0, %c0_i32 : i32
    %c0_i32_0 = arith.constant 0 : i32
    %3 = arith.addi %2, %c0_i32_0 : i32
    %c0 = arith.constant 0 : index
    %4 = arith.index_cast %3 : i32 to index
    %c0_1 = arith.constant 0 : index
    %5 = vector.load %arg2[%c0, %4, %c0_1] : memref<1x1190x4xf32, #tpu.memory_space<vmem>>, vector<1x136x4xf32>
    %6 = vector.shape_cast %5 : vector<1x136x4xf32> to vector<136x4xf32>
    %7 = arith.truncf %6 : vector<136x4xf32> to vector<136x4xbf16>
    %c0_2 = arith.constant 0 : index
    %c0_3 = arith.constant 0 : index
    %c0_4 = arith.constant 0 : index
    %8 = vector.load %arg3[%c0_2, %c0_3, %c0_4] : memref<9x4x64xbf16, #tpu.memory_space<vmem>>, vector<1x4x64xbf16>
    %9 = vector.shape_cast %8 : vector<1x4x64xbf16> to vector<4x64xbf16>
    %cst_5 = arith.constant dense<0.000000e+00> : vector<136x64xf32>
    %10 = tpu.matmul %7, %9, %cst_5 {dimension_numbers = #tpu.dot_dimension_numbers<[1], [0], [0], [1], [0, 0, 1, 1], [], []>} : vector<136x4xbf16>, vector<4x64xbf16>, vector<136x64xf32> -> vector<136x64xf32>
    %11 = arith.addf %1, %10 : vector<136x64xf32>
    %c0_i32_6 = arith.constant 0 : i32
    %12 = arith.addi %0, %c0_i32_6 : i32
    %c1_i32 = arith.constant 1 : i32
    %13 = arith.addi %12, %c1_i32 : i32
    %c0_7 = arith.constant 0 : index
    %14 = arith.index_cast %13 : i32 to index
    %c0_8 = arith.constant 0 : index
    %15 = vector.load %arg2[%c0_7, %14, %c0_8] : memref<1x1190x4xf32, #tpu.memory_space<vmem>>, vector<1x136x4xf32>
    %16 = vector.shape_cast %15 : vector<1x136x4xf32> to vector<136x4xf32>
    %17 = arith.truncf %16 : vector<136x4xf32> to vector<136x4xbf16>
    %c1 = arith.constant 1 : index
    %c0_9 = arith.constant 0 : index
    %c0_10 = arith.constant 0 : index
    %18 = vector.load %arg3[%c1, %c0_9, %c0_10] : memref<9x4x64xbf16, #tpu.memory_space<vmem>>, vector<1x4x64xbf16>
    %19 = vector.shape_cast %18 : vector<1x4x64xbf16> to vector<4x64xbf16>
    %cst_11 = arith.constant dense<0.000000e+00> : vector<136x64xf32>
    %20 = tpu.matmul %17, %19, %cst_11 {dimension_numbers = #tpu.dot_dimension_numbers<[1], [0], [0], [1], [0, 0, 1, 1], [], []>} : vector<136x4xbf16>, vector<4x64xbf16>, vector<136x64xf32> -> vector<136x64xf32>
    %21 = arith.addf %11, %20 : vector<136x64xf32>
    %c0_i32_12 = arith.constant 0 : i32
    %22 = arith.addi %0, %c0_i32_12 : i32
    %c2_i32 = arith.constant 2 : i32
    %23 = arith.addi %22, %c2_i32 : i32
    %c0_13 = arith.constant 0 : index
    %24 = arith.index_cast %23 : i32 to index
    %c0_14 = arith.constant 0 : index
    %25 = vector.load %arg2[%c0_13, %24, %c0_14] : memref<1x1190x4xf32, #tpu.memory_space<vmem>>, vector<1x136x4xf32>
    %26 = vector.shape_cast %25 : vector<1x136x4xf32> to vector<136x4xf32>
    %27 = arith.truncf %26 : vector<136x4xf32> to vector<136x4xbf16>
    %c2 = arith.constant 2 : index
    %c0_15 = arith.constant 0 : index
    %c0_16 = arith.constant 0 : index
    %28 = vector.load %arg3[%c2, %c0_15, %c0_16] : memref<9x4x64xbf16, #tpu.memory_space<vmem>>, vector<1x4x64xbf16>
    %29 = vector.shape_cast %28 : vector<1x4x64xbf16> to vector<4x64xbf16>
    %cst_17 = arith.constant dense<0.000000e+00> : vector<136x64xf32>
    %30 = tpu.matmul %27, %29, %cst_17 {dimension_numbers = #tpu.dot_dimension_numbers<[1], [0], [0], [1], [0, 0, 1, 1], [], []>} : vector<136x4xbf16>, vector<4x64xbf16>, vector<136x64xf32> -> vector<136x64xf32>
    %31 = arith.addf %21, %30 : vector<136x64xf32>
    %c34_i32 = arith.constant 34 : i32
    %32 = arith.addi %0, %c34_i32 : i32
    %c0_i32_18 = arith.constant 0 : i32
    %33 = arith.addi %32, %c0_i32_18 : i32
    %c0_19 = arith.constant 0 : index
    %34 = arith.index_cast %33 : i32 to index
    %c0_20 = arith.constant 0 : index
    %35 = vector.load %arg2[%c0_19, %34, %c0_20] : memref<1x1190x4xf32, #tpu.memory_space<vmem>>, vector<1x136x4xf32>
    %36 = vector.shape_cast %35 : vector<1x136x4xf32> to vector<136x4xf32>
    %37 = arith.truncf %36 : vector<136x4xf32> to vector<136x4xbf16>
    %c3 = arith.constant 3 : index
    %c0_21 = arith.constant 0 : index
    %c0_22 = arith.constant 0 : index
    %38 = vector.load %arg3[%c3, %c0_21, %c0_22] : memref<9x4x64xbf16, #tpu.memory_space<vmem>>, vector<1x4x64xbf16>
    %39 = vector.shape_cast %38 : vector<1x4x64xbf16> to vector<4x64xbf16>
    %cst_23 = arith.constant dense<0.000000e+00> : vector<136x64xf32>
    %40 = tpu.matmul %37, %39, %cst_23 {dimension_numbers = #tpu.dot_dimension_numbers<[1], [0], [0], [1], [0, 0, 1, 1], [], []>} : vector<136x4xbf16>, vector<4x64xbf16>, vector<136x64xf32> -> vector<136x64xf32>
    %41 = arith.addf %31, %40 : vector<136x64xf32>
    %c34_i32_24 = arith.constant 34 : i32
    %42 = arith.addi %0, %c34_i32_24 : i32
    %c1_i32_25 = arith.constant 1 : i32
    %43 = arith.addi %42, %c1_i32_25 : i32
    %c0_26 = arith.constant 0 : index
    %44 = arith.index_cast %43 : i32 to index
    %c0_27 = arith.constant 0 : index
    %45 = vector.load %arg2[%c0_26, %44, %c0_27] : memref<1x1190x4xf32, #tpu.memory_space<vmem>>, vector<1x136x4xf32>
    %46 = vector.shape_cast %45 : vector<1x136x4xf32> to vector<136x4xf32>
    %47 = arith.truncf %46 : vector<136x4xf32> to vector<136x4xbf16>
    %c4 = arith.constant 4 : index
    %c0_28 = arith.constant 0 : index
    %c0_29 = arith.constant 0 : index
    %48 = vector.load %arg3[%c4, %c0_28, %c0_29] : memref<9x4x64xbf16, #tpu.memory_space<vmem>>, vector<1x4x64xbf16>
    %49 = vector.shape_cast %48 : vector<1x4x64xbf16> to vector<4x64xbf16>
    %cst_30 = arith.constant dense<0.000000e+00> : vector<136x64xf32>
    %50 = tpu.matmul %47, %49, %cst_30 {dimension_numbers = #tpu.dot_dimension_numbers<[1], [0], [0], [1], [0, 0, 1, 1], [], []>} : vector<136x4xbf16>, vector<4x64xbf16>, vector<136x64xf32> -> vector<136x64xf32>
    %51 = arith.addf %41, %50 : vector<136x64xf32>
    %c34_i32_31 = arith.constant 34 : i32
    %52 = arith.addi %0, %c34_i32_31 : i32
    %c2_i32_32 = arith.constant 2 : i32
    %53 = arith.addi %52, %c2_i32_32 : i32
    %c0_33 = arith.constant 0 : index
    %54 = arith.index_cast %53 : i32 to index
    %c0_34 = arith.constant 0 : index
    %55 = vector.load %arg2[%c0_33, %54, %c0_34] : memref<1x1190x4xf32, #tpu.memory_space<vmem>>, vector<1x136x4xf32>
    %56 = vector.shape_cast %55 : vector<1x136x4xf32> to vector<136x4xf32>
    %57 = arith.truncf %56 : vector<136x4xf32> to vector<136x4xbf16>
    %c5 = arith.constant 5 : index
    %c0_35 = arith.constant 0 : index
    %c0_36 = arith.constant 0 : index
    %58 = vector.load %arg3[%c5, %c0_35, %c0_36] : memref<9x4x64xbf16, #tpu.memory_space<vmem>>, vector<1x4x64xbf16>
    %59 = vector.shape_cast %58 : vector<1x4x64xbf16> to vector<4x64xbf16>
    %cst_37 = arith.constant dense<0.000000e+00> : vector<136x64xf32>
    %60 = tpu.matmul %57, %59, %cst_37 {dimension_numbers = #tpu.dot_dimension_numbers<[1], [0], [0], [1], [0, 0, 1, 1], [], []>} : vector<136x4xbf16>, vector<4x64xbf16>, vector<136x64xf32> -> vector<136x64xf32>
    %61 = arith.addf %51, %60 : vector<136x64xf32>
    %c68_i32 = arith.constant 68 : i32
    %62 = arith.addi %0, %c68_i32 : i32
    %c0_i32_38 = arith.constant 0 : i32
    %63 = arith.addi %62, %c0_i32_38 : i32
    %c0_39 = arith.constant 0 : index
    %64 = arith.index_cast %63 : i32 to index
    %c0_40 = arith.constant 0 : index
    %65 = vector.load %arg2[%c0_39, %64, %c0_40] : memref<1x1190x4xf32, #tpu.memory_space<vmem>>, vector<1x136x4xf32>
    %66 = vector.shape_cast %65 : vector<1x136x4xf32> to vector<136x4xf32>
    %67 = arith.truncf %66 : vector<136x4xf32> to vector<136x4xbf16>
    %c6 = arith.constant 6 : index
    %c0_41 = arith.constant 0 : index
    %c0_42 = arith.constant 0 : index
    %68 = vector.load %arg3[%c6, %c0_41, %c0_42] : memref<9x4x64xbf16, #tpu.memory_space<vmem>>, vector<1x4x64xbf16>
    %69 = vector.shape_cast %68 : vector<1x4x64xbf16> to vector<4x64xbf16>
    %cst_43 = arith.constant dense<0.000000e+00> : vector<136x64xf32>
    %70 = tpu.matmul %67, %69, %cst_43 {dimension_numbers = #tpu.dot_dimension_numbers<[1], [0], [0], [1], [0, 0, 1, 1], [], []>} : vector<136x4xbf16>, vector<4x64xbf16>, vector<136x64xf32> -> vector<136x64xf32>
    %71 = arith.addf %61, %70 : vector<136x64xf32>
    %c68_i32_44 = arith.constant 68 : i32
    %72 = arith.addi %0, %c68_i32_44 : i32
    %c1_i32_45 = arith.constant 1 : i32
    %73 = arith.addi %72, %c1_i32_45 : i32
    %c0_46 = arith.constant 0 : index
    %74 = arith.index_cast %73 : i32 to index
    %c0_47 = arith.constant 0 : index
    %75 = vector.load %arg2[%c0_46, %74, %c0_47] : memref<1x1190x4xf32, #tpu.memory_space<vmem>>, vector<1x136x4xf32>
    %76 = vector.shape_cast %75 : vector<1x136x4xf32> to vector<136x4xf32>
    %77 = arith.truncf %76 : vector<136x4xf32> to vector<136x4xbf16>
    %c7 = arith.constant 7 : index
    %c0_48 = arith.constant 0 : index
    %c0_49 = arith.constant 0 : index
    %78 = vector.load %arg3[%c7, %c0_48, %c0_49] : memref<9x4x64xbf16, #tpu.memory_space<vmem>>, vector<1x4x64xbf16>
    %79 = vector.shape_cast %78 : vector<1x4x64xbf16> to vector<4x64xbf16>
    %cst_50 = arith.constant dense<0.000000e+00> : vector<136x64xf32>
    %80 = tpu.matmul %77, %79, %cst_50 {dimension_numbers = #tpu.dot_dimension_numbers<[1], [0], [0], [1], [0, 0, 1, 1], [], []>} : vector<136x4xbf16>, vector<4x64xbf16>, vector<136x64xf32> -> vector<136x64xf32>
    %81 = arith.addf %71, %80 : vector<136x64xf32>
    %c68_i32_51 = arith.constant 68 : i32
    %82 = arith.addi %0, %c68_i32_51 : i32
    %c2_i32_52 = arith.constant 2 : i32
    %83 = arith.addi %82, %c2_i32_52 : i32
    %c0_53 = arith.constant 0 : index
    %84 = arith.index_cast %83 : i32 to index
    %c0_54 = arith.constant 0 : index
    %85 = vector.load %arg2[%c0_53, %84, %c0_54] : memref<1x1190x4xf32, #tpu.memory_space<vmem>>, vector<1x136x4xf32>
    %86 = vector.shape_cast %85 : vector<1x136x4xf32> to vector<136x4xf32>
    %87 = arith.truncf %86 : vector<136x4xf32> to vector<136x4xbf16>
    %c8 = arith.constant 8 : index
    %c0_55 = arith.constant 0 : index
    %c0_56 = arith.constant 0 : index
    %88 = vector.load %arg3[%c8, %c0_55, %c0_56] : memref<9x4x64xbf16, #tpu.memory_space<vmem>>, vector<1x4x64xbf16>
    %89 = vector.shape_cast %88 : vector<1x4x64xbf16> to vector<4x64xbf16>
    %cst_57 = arith.constant dense<0.000000e+00> : vector<136x64xf32>
    %90 = tpu.matmul %87, %89, %cst_57 {dimension_numbers = #tpu.dot_dimension_numbers<[1], [0], [0], [1], [0, 0, 1, 1], [], []>} : vector<136x4xbf16>, vector<4x64xbf16>, vector<136x64xf32> -> vector<136x64xf32>
    %91 = arith.addf %81, %90 : vector<136x64xf32>
    %c0_58 = arith.constant 0 : index
    %c0_59 = arith.constant 0 : index
    %92 = vector.load %arg4[%c0_58, %c0_59] : memref<1x64xf32, #tpu.memory_space<vmem>>, vector<1x64xf32>
    %93 = vector.broadcast %92 : vector<1x64xf32> to vector<136x64xf32>
    %94 = arith.mulf %91, %93 : vector<136x64xf32>
    %c0_60 = arith.constant 0 : index
    %c0_61 = arith.constant 0 : index
    %95 = vector.load %arg5[%c0_60, %c0_61] : memref<1x64xf32, #tpu.memory_space<vmem>>, vector<1x64xf32>
    %96 = vector.broadcast %95 : vector<1x64xf32> to vector<136x64xf32>
    %97 = arith.addf %94, %96 : vector<136x64xf32>
    %cst_62 = arith.constant 0.000000e+00 : f32
    %98 = vector.broadcast %cst_62 : f32 to vector<136x64xf32>
    %99 = arith.maximumf %97, %98 : vector<136x64xf32>
    %c0_63 = arith.constant 0 : index
    %c0_64 = arith.constant 0 : index
    %c0_65 = arith.constant 0 : index
    %100 = vector.load %arg6[%c0_63, %c0_64, %c0_65] : memref<1x136x64xf32, #tpu.memory_space<vmem>>, vector<1x136x64xf32>
    %101 = vector.shape_cast %100 : vector<1x136x64xf32> to vector<136x64xf32>
    %102 = vector.shape_cast %99 : vector<136x64xf32> to vector<1x136x64xf32>
    tpu.vector_store %arg6[%c0_63, %c0_64, %c0_65], %102 {strides = array<i32>} : memref<1x136x64xf32, #tpu.memory_space<vmem>>, vector<1x136x64xf32>,
    return
  }
  func.func @transform_0(%arg0: i32, %arg1: i32) -> (i32, i32, i32) {
    %c0_i32 = arith.constant 0 : i32
    %c0_i32_0 = arith.constant 0 : i32
    %c0_i32_1 = arith.constant 0 : i32
    return %arg0, %c0_i32, %c0_i32_0 : i32, i32, i32
  }
  func.func @transform_1(%arg0: i32, %arg1: i32) -> (i32, i32, i32) {
    %c0_i32 = arith.constant 0 : i32
    %c0_i32_0 = arith.constant 0 : i32
    %c0_i32_1 = arith.constant 0 : i32
    %c0_i32_2 = arith.constant 0 : i32
    return %c0_i32, %c0_i32_0, %c0_i32_1 : i32, i32, i32
  }
  func.func @transform_2(%arg0: i32, %arg1: i32) -> (i32, i32) {
    %c0_i32 = arith.constant 0 : i32
    %c0_i32_0 = arith.constant 0 : i32
    %c0_i32_1 = arith.constant 0 : i32
    return %c0_i32, %c0_i32_0 : i32, i32
  }
  func.func @transform_3(%arg0: i32, %arg1: i32) -> (i32, i32) {
    %c0_i32 = arith.constant 0 : i32
    %c0_i32_0 = arith.constant 0 : i32
    %c0_i32_1 = arith.constant 0 : i32
    return %c0_i32, %c0_i32_0 : i32, i32
  }
  func.func @transform_4(%arg0: i32, %arg1: i32) -> (i32, i32, i32) {
    %c0_i32 = arith.constant 0 : i32
    %c0_i32_0 = arith.constant 0 : i32
    return %arg0, %arg1, %c0_i32 : i32, i32, i32
  }
}

</mosaic_0001>

<bundles_post_ra>
// kernel: tpu_custom_call.1
= control target key start
LH: loop header
LB: loop body
LE: loop exit
PB: predicated region body
PF: predicated region fallthrough
CT: control target
= control target key end

     0   :  { %s1892_s15 = smov 0   ;;  %s1894_s16 = smov 0   ;;  %s2430_s0 = inlined_call_operand.vmem [shape: f32[2,1190,4], index: 0, kind: input, shape index: {}]   ;;  %s2431_s1 = inlined_call_operand.vmem [shape: bf16[9,4,64], index: 1, kind: input, shape index: {}]   ;;  %s2432_s2 = inlined_call_operand.vmem [shape: f32[1,64], index: 2, kind: input, shape index: {}]   ;;  %s2433_s3 = inlined_call_operand.vmem [shape: f32[1,64], index: 3, kind: input, shape index: {}]   ;;  %s2434_s4 = inlined_call_operand.vmem [shape: f32[2,1088,64], index: 4, kind: output, shape index: {}]  }
   0x1   :  { %s1896_s17 = smov 0   ;;  %s1898_s18 = smov 0  }
   0x2   :  { %s1900_s19 = smov 0  }
   0x3 LB: > { %s23_s20 = sadd.s32 1, %s1857_s17  ;;  %s26_s21 = sadd.s32 1, %s1861_s18  ;;  %s1865_s19 = sphi %s1900_s19, %s14_s19   ;;  %s1861_s18 = sphi %s1898_s18, %s2438_s18   ;;  %s1857_s17 = sphi %s1896_s17, %s2437_s17   ;;  %s1853_s16 = sphi %s1894_s16, %s2436_s16   ;;  %s1849_s15 = sphi %s1892_s15, %s2435_s15  }
   0x4   : > { %p24_p0 = scmp.ge.s32.totalorder %s23_s20, 8  ;;  %p1550_p1 = scmp.ge.s32.totalorder %s1865_s19, 1 }
   0x5   : > { %p176_p2 = scmp.lt.s32.totalorder %s1865_s19, 17 }
   0x6   : > { %s2440_s20 = smov (%p24_p0, %s23_s20), 0  ;;  %s2442_s21 = smov (!%p24_p0, %s26_s21), %s1861_s18 }
   0x7   : > { %p177_p3 = pnand %p1550_p1, %p176_p2  ;;  %p28_p4 = scmp.ge.s32.totalorder %s2442_s21, 2 }
   0x8   : > { %p206_p5 = scmp.lt.s32.totalorder (!%p177_p3), %s1853_s16, 1  ;;  %s222_s30 = smul.u32 (!%p177_p3), 136, %s1849_s15 }
   0x9   : > { %s2444_s21 = smov (%p28_p4, %s2442_s21), 0  ;;  %180 = sbr.rel (%p177_p3) target bundleno = 489 (0x1e9), region = 36 }
   0xa   : > { %s211_s27 = smul.u32 (!%p177_p3), 17, %s1849_s15 }
   0xc   : > { %p214_p6 = scmp.lt.s32.totalorder (!%p177_p3), %s211_s27, 135 }
   0xe   : > { %v1570_v0 = vld [vmem:[%s2431_s1 + $0x2] sm:$0x3]  ;;  %vm309_vm0 = vcmask 1041408   ;;  %v1606_v2 = vld [vmem:[%s2431_s1 + $0x4] sm:$0x3]  ;;  %s2446_s16 = smov (!%p206_p5, %s1853_s16), 1 }
   0xf   : > { %v311_v1 = vsel %vm309_vm0, %v1570_v0, 0  ;;  %v250_v3 = vld [vmem:[%s2431_s1] sm:$0x3]  ;;  %v507_v4 = vsel %vm309_vm0, %v1606_v2, 0  ;;  %v1633_v6 = vld [vmem:[%s2431_s1 + $0x6] sm:$0x3] }
  0x10   : > { %1780 = vmatpush.bf16.msra.mxu1 %v311_v1  ;;  %1781 = vmatpush.bf16.msra.mxu2 %v311_v1  ;;  %v394_v5 = vsel %vm309_vm0, %v250_v3, 0  ;;  %v637_v7 = vsel %vm309_vm0, %v1633_v6, 0  ;;  %s1783_s5 = smul.u32 1192, %s2446_s16  ;;  %vm281_vm1 = vcmask 31744   ;;  %v1660_v20 = vld [vmem:[%s2431_s1 + $0x8] sm:$0x3] }
  0x11   : > { %1782 = vmatpush.bf16.msra.mxu3 %v311_v1  ;;  %320 = vmatpush.bf16.msra.mxu0 %v311_v1  ;;  %v767_v21 = vsel %vm309_vm0, %v1660_v20, 0  ;;  %v1714_v32 = vld [vmem:[%s2431_s1 + $0xc] sm:$0x3]  ;;  %v1741_v34 = vld [vmem:[%s2431_s1 + $0xe] sm:$0x3]  ;;  %s1784_s28 = smul.u32 136, %s2446_s16 }
  0x12   : > { %s210_s8 = scalar_lea.vmem %s2430_s0, %s1783_s5  ;;  %v1687_v35 = vld [vmem:[%s2431_s1 + $0xa] sm:$0x3]  ;;  %v1027_v36 = vsel %vm309_vm0, %v1714_v32, 0  ;;  %v1157_v37 = vsel %vm309_vm0, %v1741_v34, 0  ;;  %v1768_v39 = vld [vmem:[%s2431_s1 + $0x10] sm:$0x3] }
  0x13   : > { %s1947_s9 = scalar_lea.vmem %s210_s8, %s222_s30  ;;  %v897_v38 = vsel %vm309_vm0, %v1687_v35, 0  ;;  %v1287_v40 = vsel %vm309_vm0, %v1768_v39, 0  ;;  %s2448_s27 = smov (!%p214_p6, %s211_s27), 135  ;;  %vm1418_vm2 = vcmask 523264  }
  0x14   : > { %516 = vmatpush.bf16.msrb.mxu2 %v507_v4  ;;  %403 = vmatpush.bf16.msrb.mxu1 %v394_v5  ;;  %v1555_v8 = vld [vmem:[%s1947_s9 + $0x11] sm:$0xff]  ;;  %v1556_v9 = vld [vmem:[%s1947_s9 + $0x19] sm:$0xff]  ;;  %v1561_v10 = vld [vmem:[%s1947_s9 + $0x41] sm:$0xff]  ;;  %s217_s30 = sadd.s32 %s1784_s28, %s2448_s27 }
  0x15   : > { %646 = vmatpush.bf16.msrb.mxu3 %v637_v7  ;;  %v271_v11 = vpack.c.bf16 %v1556_v9, %v1555_v8  ;;  %v1562_v12 = vld [vmem:[%s1947_s9 + $0x49] sm:$0xff]  ;;  %v1567_v13 = vld [vmem:[%s1947_s9 + $0x71] sm:$0xff]  ;;  %v1568_v14 = vld [vmem:[%s1947_s9 + $0x79] sm:$0xff]  ;;  %776 = vmatpush.bf16.msrb.mxu0 %v767_v21  ;;  %s1552_s16 = sshll.u32 %s217_s30, 3 }
  0x16   : > { %v274_v15 = vpack.c.bf16 %v1562_v12, %v1561_v10  ;;  %v277_v16 = vpack.c.bf16 %v1568_v14, %v1567_v13  ;;  %v1553_v17 = vld [vmem:[%s1947_s9 + $0x1] sm:$0xff]  ;;  %v1554_v18 = vld [vmem:[%s1947_s9 + $0x9] sm:$0xff]  ;;  %v1563_v24 = vld [vmem:[%s1947_s9 + $0x51] sm:$0xff] }
  0x17   : > { %1572 = vmatmul.msk.bf16.vlgmr.msra.gmra.mxu1 %vm281_vm1, %v271_v11  ;;  %v270_v19 = vpack.c.bf16 %v1554_v18, %v1553_v17  ;;  %v1557_v22 = vld [vmem:[%s1947_s9 + $0x21] sm:$0xff]  ;;  %v1558_v23 = vld [vmem:[%s1947_s9 + $0x29] sm:$0xff]  ;;  %v1564_v25 = vld [vmem:[%s1947_s9 + $0x59] sm:$0xff] }
  0x18   : > { %1575 = vmatmul.msk.bf16.vlgmr.msra.gmra.mxu2 %vm281_vm1, %v274_v15  ;;  %1578 = vmatmul.msk.bf16.vlgmr.msra.gmra.mxu3 %vm281_vm1, %v277_v16  ;;  %v1569_v26 = vld [vmem:[%s1947_s9 + $0x81] sm:$0xff]  ;;  %v272_v27 = vpack.c.bf16 %v1558_v23, %v1557_v22  ;;  %v275_v28 = vpack.c.bf16 %v1564_v25, %v1563_v24  ;;  %v1644_v31 = vld [vmem:[%s1947_s9 + $0x2b] sm:$0xff]  ;;  %v1560_v42 = vld [vmem:[%s1947_s9 + $0x39] sm:$0xff] }
  0x19   : > { %1571 = vmatmul.msk.bf16.vlgmr.msra.gmra.mxu0 %vm281_vm1, %v270_v19  ;;  %v278_v29 = vpack.c.bf16 %v1569_v26, %v1569_v26  ;;  %v1643_v30 = vld [vmem:[%s1947_s9 + $0x23] sm:$0xff]  ;;  %1036 = vmatpush.bf16.msra.mxu2 %v1027_v36  ;;  %v1559_v41 = vld [vmem:[%s1947_s9 + $0x31] sm:$0xff]  ;;  %v1646_v51 = vld [vmem:[%s1947_s9 + $0x3b] sm:$0xff] }
  0x1a   : > { %v728_v33 = vpack.c.bf16 %v1644_v31, %v1643_v30  ;;  %1166 = vmatpush.bf16.msra.mxu3 %v1157_v37  ;;  %906 = vmatpush.bf16.msra.mxu1 %v897_v38  ;;  %v1565_v43 = vld [vmem:[%s1947_s9 + $0x61] sm:$0xff]  ;;  %v1566_v44 = vld [vmem:[%s1947_s9 + $0x69] sm:$0xff]  ;;  %v273_v47 = vpack.c.bf16 %v1560_v42, %v1559_v41  ;;  %v1645_v50 = vld [vmem:[%s1947_s9 + $0x33] sm:$0xff] }
  0x1b   : > { %1296 = vmatpush.bf16.msra.mxu0 %v1287_v40  ;;  %v1616_v45 = vld [vmem:[%s1947_s9 + $0x22] sm:$0xff]  ;;  %v1617_v46 = vld [vmem:[%s1947_s9 + $0x2a] sm:$0xff]  ;;  %v276_v48 = vpack.c.bf16 %v1566_v44, %v1565_v43  ;;  %v729_v52 = vpack.c.bf16 %v1646_v51, %v1645_v50  ;;  %v1618_v57 = vld [vmem:[%s1947_s9 + $0x32] sm:$0xff] }
  0x1c   : > { %v598_v49 = vpack.c.bf16 %v1617_v46, %v1616_v45  ;;  %v224_v53 = vld [vmem:[%s1947_s9] sm:$0xff]  ;;  %v225_v54 = vld [vmem:[%s1947_s9 + $0x8] sm:$0xff]  ;;  %v226_v1 = vld [vmem:[%s1947_s9 + $0x10] sm:$0xff] }
  0x1d   : > { %v1589_v55 = vld [vmem:[%s1947_s9 + $0x2] sm:$0xff]  ;;  %v1590_v56 = vld [vmem:[%s1947_s9 + $0xa] sm:$0xff]  ;;  %v1619_v58 = vld [vmem:[%s1947_s9 + $0x3a] sm:$0xff]  ;;  %v241_v59 = vpack.c.bf16 %v225_v54, %v224_v53 }
  0x1e   : > { %v468_v60 = vpack.c.bf16 %v1590_v56, %v1589_v55  ;;  %v599_v61 = vpack.c.bf16 %v1619_v58, %v1618_v57  ;;  %v1647_v62 = vld [vmem:[%s1947_s9 + $0x43] sm:$0xff]  ;;  %v1648_v63 = vld [vmem:[%s1947_s9 + $0x4b] sm:$0xff]  ;;  %v227_v2 = vld [vmem:[%s1947_s9 + $0x18] sm:$0xff] }
  0x1f   : > { %v730_v0 = vpack.c.bf16 %v1648_v63, %v1647_v62  ;;  %v1591_v3 = vld [vmem:[%s1947_s9 + $0x12] sm:$0xff]  ;;  %v1592_v4 = vld [vmem:[%s1947_s9 + $0x1a] sm:$0xff]  ;;  %v1620_v5 = vld [vmem:[%s1947_s9 + $0x42] sm:$0xff]  ;;  %v242_v7 = vpack.c.bf16 %v227_v2, %v226_v1 }
  0x20   : > { %v1621_v6 = vld [vmem:[%s1947_s9 + $0x4a] sm:$0xff]  ;;  %v469_v8 = vpack.c.bf16 %v1592_v4, %v1591_v3  ;;  %v1649_v10 = vld [vmem:[%s1947_s9 + $0x53] sm:$0xff]  ;;  %v1650_v11 = vld [vmem:[%s1947_s9 + $0x5b] sm:$0xff] }
  0x21   : > { %v600_v9 = vpack.c.bf16 %v1621_v6, %v1620_v5  ;;  %v731_v12 = vpack.c.bf16 %v1650_v11, %v1649_v10  ;;  %v228_v13 = vld [vmem:[%s1947_s9 + $0x20] sm:$0xff]  ;;  %v229_v14 = vld [vmem:[%s1947_s9 + $0x28] sm:$0xff]  ;;  %v1622_v15 = vld [vmem:[%s1947_s9 + $0x52] sm:$0xff] }
  0x22   : > { %v1623_v16 = vld [vmem:[%s1947_s9 + $0x5a] sm:$0xff]  ;;  %v243_v17 = vpack.c.bf16 %v229_v14, %v228_v13  ;;  %v1651_v19 = vld [vmem:[%s1947_s9 + $0x63] sm:$0xff]  ;;  %v1652_v20 = vld [vmem:[%s1947_s9 + $0x6b] sm:$0xff] }
  0x23   : > { %v601_v18 = vpack.c.bf16 %v1623_v16, %v1622_v15  ;;  %v732_v21 = vpack.c.bf16 %v1652_v20, %v1651_v19  ;;  %v230_v22 = vld [vmem:[%s1947_s9 + $0x30] sm:$0xff]  ;;  %v231_v23 = vld [vmem:[%s1947_s9 + $0x38] sm:$0xff]  ;;  %v1624_v24 = vld [vmem:[%s1947_s9 + $0x62] sm:$0xff] }
  0x24   : > { %v1625_v25 = vld [vmem:[%s1947_s9 + $0x6a] sm:$0xff]  ;;  %v244_v26 = vpack.c.bf16 %v231_v23, %v230_v22  ;;  %v232_v31 = vld [vmem:[%s1947_s9 + $0x40] sm:$0xff]  ;;  %v235_v41 = vld [vmem:[%s1947_s9 + $0x58] sm:$0xff] }
  0x25   : > { %v233_v32 = vld [vmem:[%s1947_s9 + $0x48] sm:$0xff]  ;;  %v1627_v34 = vld [vmem:[%s1947_s9 + $0x7a] sm:$0xff]  ;;  %v234_v40 = vld [vmem:[%s1947_s9 + $0x50] sm:$0xff] }
  0x26   : > { %v245_v35 = vpack.c.bf16 %v233_v32, %v232_v31  ;;  %v1655_v37 = vld [vmem:[%s1947_s9 + $0x83] sm:$0xff]  ;;  %v1656_v38 = vld [vmem:[%s1947_s9 + $0x8b] sm:$0xff]  ;;  %v246_v44 = vpack.c.bf16 %v235_v41, %v234_v40  ;;  %v1631_v57 = vld [vmem:[%s1947_s9 + $0x9a] sm:$0xff] }
  0x27   : > { %1573 = vmatmul.msk.bf16.gmra.mxu1 %vm281_vm1, %v272_v27  ;;  %v602_v27 = vpack.c.bf16 %v1625_v25, %v1624_v24  ;;  %v734_v39 = vpack.c.bf16 %v1656_v38, %v1655_v37  ;;  %v2061_v42 = vld [vmem:[%s1947_s9 + $0x82] sm:$0xff]  ;;  %v1629_v43 = vld [vmem:[%s1947_s9 + $0x8a] sm:$0xff]  ;;  %v1630_v56 = vld [vmem:[%s1947_s9 + $0x92] sm:$0xff] }
  0x28   : > { %1576 = vmatmul.msk.bf16.gmra.mxu2 %vm281_vm1, %v275_v28  ;;  %1579 = vmatmul.msk.bf16.gmra.mxu3 %vm281_vm1, %v278_v29  ;;  %v1653_v28 = vld [vmem:[%s1947_s9 + $0x73] sm:$0xff]  ;;  %v1654_v29 = vld [vmem:[%s1947_s9 + $0x7b] sm:$0xff]  ;;  %v604_v46 = vpack.c.bf16 %v1629_v43, %v2061_v42  ;;  %v237_v55 = vld [vmem:[%s1947_s9 + $0x68] sm:$0xff]  ;;  %v605_v63 = vpack.c.bf16 %v1631_v57, %v1630_v56 }
  0x29   : > { %1661 = vmatmul.msk.bf16.vlgmr.msrb.gmra.mxu0 %vm281_vm1, %v728_v33  ;;  %v733_v30 = vpack.c.bf16 %v1654_v29, %v1653_v28  ;;  %v1626_v33 = vld [vmem:[%s1947_s9 + $0x72] sm:$0xff]  ;;  %v236_v54 = vld [vmem:[%s1947_s9 + $0x60] sm:$0xff] }
  0x2a   : > { %v603_v36 = vpack.c.bf16 %v1627_v34, %v1626_v33  ;;  %v238_v6 = vld [vmem:[%s1947_s9 + $0x70] sm:$0xff]  ;;  %v1751_v15 = vld [vmem:[%s1947_s9 + $0x46] sm:$0xff]  ;;  %v1754_v34 = vld [vmem:[%s1947_s9 + $0x5e] sm:$0xff] }
  0x2b   : > { %v1752_v16 = vld [vmem:[%s1947_s9 + $0x4e] sm:$0xff]  ;;  %v240_v22 = vld [vmem:[%s1947_s9 + $0x80] sm:$0xff]  ;;  %v1753_v33 = vld [vmem:[%s1947_s9 + $0x56] sm:$0xff] }
  0x2c   : > { %v1724_v23 = vld [vmem:[%s1947_s9 + $0x45] sm:$0xff]  ;;  %v1725_v24 = vld [vmem:[%s1947_s9 + $0x4d] sm:$0xff] }
  0x2d   : > { %v1118_v31 = vpack.c.bf16 %v1725_v24, %v1724_v23  ;;  %v1670_v43 = vld [vmem:[%s1947_s9 + $0x24] sm:$0xff]  ;;  %v1673_v23 = vld [vmem:[%s1947_s9 + $0x3c] sm:$0xff]  ;;  %v1699_v24 = vld [vmem:[%s1947_s9 + $0x54] sm:$0xff] }
  0x37   : > { %1574 = vmatmul.msk.bf16.gmra.mxu1 %vm281_vm1, %v273_v47  ;;  %v1657_v47 = vld [vmem:[%s1947_s9 + $0x93] sm:$0xff] }
  0x38   : > { %1577 = vmatmul.msk.bf16.gmra.mxu2 %vm281_vm1, %v276_v48  ;;  %1634 = vmatmul.msk.bf16.vlgmr.msrb.gmra.mxu3 %vm281_vm1, %v598_v49  ;;  %v1658_v48 = vld [vmem:[%s1947_s9 + $0x9b] sm:$0xff] }
  0x39   : > { %1662 = vmatmul.msk.bf16.gmra.mxu0 %vm281_vm1, %v729_v52 }
  0x47   : > { %1580 = vmatmul.msk.bf16.vlgmr.msrb.gmra.mxu1 %vm281_vm1, %v241_v59 }
  0x48   : > { %1607 = vmatmul.msk.bf16.vlgmr.msrb.gmra.mxu2 %vm281_vm1, %v468_v60  ;;  %1635 = vmatmul.msk.bf16.gmra.mxu3 %vm281_vm1, %v599_v61  ;;  %v247_v60 = vpack.c.bf16 %v237_v55, %v236_v54 }
  0x49   : > { %1663 = vmatmul.msk.bf16.gmra.mxu0 %vm281_vm1, %v730_v0  ;;  %v1659_v0 = vld [vmem:[%s1947_s9 + $0xa3] sm:$0xff] }
  0x4a   : > { %v736_v1 = vpack.c.bf16 %v1659_v0, %v1659_v0 }
  0x57   : > { %1581 = vmatmul.msk.bf16.gmra.mxu1 %vm281_vm1, %v242_v7  ;;  %v239_v7 = vld [vmem:[%s1947_s9 + $0x78] sm:$0xff] }
  0x58   : > { %1608 = vmatmul.msk.bf16.gmra.mxu2 %vm281_vm1, %v469_v8  ;;  %1636 = vmatmul.msk.bf16.gmra.mxu3 %vm281_vm1, %v600_v9  ;;  %v1632_v8 = vld [vmem:[%s1947_s9 + $0xa2] sm:$0xff]  ;;  %v248_v11 = vpack.c.bf16 %v239_v7, %v238_v6  ;;  %v1756_v7 = vld [vmem:[%s1947_s9 + $0x6e] sm:$0xff] }
  0x59   : > { %1664 = vmatmul.msk.bf16.gmra.mxu0 %vm281_vm1, %v731_v12  ;;  %v606_v14 = vpack.c.bf16 %v1632_v8, %v1632_v8 }
  0x67   : > { %1582 = vmatmul.msk.bf16.gmra.mxu1 %vm281_vm1, %v243_v17  ;;  %v1248_v17 = vpack.c.bf16 %v1752_v16, %v1751_v15 }
  0x68   : > { %1609 = vmatmul.msk.bf16.gmra.mxu2 %vm281_vm1, %v598_v49  ;;  %1637 = vmatmul.msk.bf16.gmra.mxu3 %vm281_vm1, %v601_v18  ;;  %v735_v49 = vpack.c.bf16 %v1658_v48, %v1657_v47  ;;  %v1698_v48 = vld [vmem:[%s1947_s9 + $0x4c] sm:$0xff] }
  0x69   : > { %1665 = vmatmul.msk.bf16.gmra.mxu0 %vm281_vm1, %v732_v21 }
  0x77   : > { %1583 = vmatmul.msk.bf16.gmra.mxu1 %vm281_vm1, %v244_v26 }
  0x78   : > { %1610 = vmatmul.msk.bf16.gmra.mxu2 %vm281_vm1, %v599_v61  ;;  %1638 = vmatmul.msk.bf16.gmra.mxu3 %vm281_vm1, %v602_v27 }
  0x79   : > { %1666 = vmatmul.msk.bf16.gmra.mxu0 %vm281_vm1, %v733_v30  ;;  %v476_v30 = vpack.c.bf16 %v2061_v42, %v2061_v42 }
  0x87   : > { %1584 = vmatmul.msk.bf16.gmra.mxu1 %vm281_vm1, %v245_v35  ;;  %v1249_v35 = vpack.c.bf16 %v1754_v34, %v1753_v33 }
  0x88   : > { %1611 = vmatmul.msk.bf16.gmra.mxu2 %vm281_vm1, %v600_v9  ;;  %1639 = vmatmul.msk.bf16.gmra.mxu3 %vm281_vm1, %v603_v36 }
  0x89   : > { %1667 = vmatmul.msk.bf16.gmra.mxu0 %vm281_vm1, %v734_v39 }
  0x94   : > { %v2064_v45 = vpop.f32.mrf.mxu1 }
  0x96   : > { %v322_v50 = vpop.f32.mrf.mxu0 }
  0x97   : > { %1585 = vmatmul.msk.bf16.gmra.mxu1 %vm281_vm1, %v246_v44  ;;  %v1671_v44 = vld [vmem:[%s1947_s9 + $0x2c] sm:$0xff] }
  0x98   : > { %1612 = vmatmul.msk.bf16.gmra.mxu2 %vm281_vm1, %v601_v18  ;;  %1640 = vmatmul.msk.bf16.gmra.mxu3 %vm281_vm1, %v604_v46  ;;  %v1697_v46 = vld [vmem:[%s1947_s9 + $0x44] sm:$0xff]  ;;  %v858_v56 = vpack.c.bf16 %v1671_v44, %v1670_v43 }
  0x99   : > { %1668 = vmatmul.msk.bf16.gmra.mxu0 %vm281_vm1, %v735_v49  ;;  %v1726_v49 = vld [vmem:[%s1947_s9 + $0x55] sm:$0xff]  ;;  %v2148_v0 = vpack.c.bf16 %v1698_v48, %v1697_v46 }
  0x9b   : > { %v2072_v51 = vpop.f32.mrf.mxu2  ;;  %v2074_v52 = vpop.f32.mrf.mxu3 }
  0x9c   : > { %v2076_v53 = vpop.f32.mrf.mxu1 }
  0x9e   : > { %v324_v58 = vpop.f32.mrf.mxu0 }
  0xa3   : > { %v2083_v59 = vpop.f32.mrf.mxu2  ;;  %v2085_v61 = vpop.f32.mrf.mxu3 }
  0xa4   : > { %v2087_v62 = vpop.f32.mrf.mxu1 }
  0xa6   : > { %v778_v2 = vpop.f32.mrf.mxu0 }
  0xa7   : > { %1586 = vmatmul.msk.bf16.gmra.mxu1 %vm281_vm1, %v247_v60 }
  0xa8   : > { %1613 = vmatmul.msk.bf16.gmra.mxu2 %vm281_vm1, %v602_v27  ;;  %1641 = vmatmul.msk.bf16.gmra.mxu3 %vm281_vm1, %v605_v63  ;;  %v249_v27 = vpack.c.bf16 %v240_v22, %v240_v22  ;;  %v1672_v22 = vld [vmem:[%s1947_s9 + $0x34] sm:$0xff] }
  0xa9   : > { %1669 = vmatmul.msk.bf16.gmra.mxu0 %vm281_vm1, %v736_v1 }
  0xab   : > { %v2093_v3 = vpop.f32.mrf.mxu2  ;;  %v2095_v4 = vpop.f32.mrf.mxu3 }
  0xac   : > { %v2097_v5 = vpop.f32.mrf.mxu1 }
  0xae   : > { %v2103_v9 = vpop.f32.mrf.mxu0 }
  0xb3   : > { %v2105_v10 = vpop.f32.mrf.mxu2  ;;  %v364_v12 = vpop.f32.mrf.mxu3 }
  0xb4   : > { %v2107_v13 = vpop.f32.mrf.mxu1 }
  0xb6   : > { %v2114_v18 = vpop.f32.mrf.mxu0 }
  0xb7   : > { %1587 = vmatmul.msk.bf16.gmra.mxu1 %vm281_vm1, %v248_v11 }
  0xb8   : > { %1614 = vmatmul.msk.bf16.gmra.mxu2 %vm281_vm1, %v603_v36  ;;  %1642 = vmatmul.msk.bf16.gmra.mxu3 %vm281_vm1, %v606_v14 }
  0xb9   : > { %1769 = vmatmul.msk.bf16.vlgmr.msra.gmra.mxu0 %vm281_vm1, %v1248_v17 }
  0xbb   : > { %v2116_v19 = vpop.f32.mrf.mxu2  ;;  %v648_v20 = vpop.f32.mrf.mxu3 }
  0xbc   : > { %v2118_v21 = vpop.f32.mrf.mxu1 }
  0xbe   : > { %v2124_v25 = vpop.f32.mrf.mxu0 }
  0xc3   : > { %v2126_v26 = vpop.f32.mrf.mxu2  ;;  %v650_v28 = vpop.f32.mrf.mxu3 }
  0xc4   : > { %v405_v29 = vpop.f32.mrf.mxu1 }
  0xc5   : > { %v406_v32 = vadd.f32 %v405_v29, %v322_v50  ;;  %v1727_v50 = vld [vmem:[%s1947_s9 + $0x5d] sm:$0xff]  ;;  %v1729_v29 = vld [vmem:[%s1947_s9 + $0x6d] sm:$0xff] }
  0xc6   : > { %v2135_v36 = vpop.f32.mrf.mxu0 }
  0xc7   : > { %1588 = vmatmul.msk.bf16.gmra.mxu1 %vm281_vm1, %v249_v27 }
  0xc8   : > { %1615 = vmatmul.msk.bf16.gmra.mxu2 %vm281_vm1, %v476_v30  ;;  %1742 = vmatmul.msk.bf16.vlgmr.msra.gmra.mxu3 %vm281_vm1, %v1118_v31 }
  0xc9   : > { %1770 = vmatmul.msk.bf16.gmra.mxu0 %vm281_vm1, %v1249_v35 }
  0xcb   : > { %v518_v37 = vpop.f32.mrf.mxu2  ;;  %v653_v38 = vpop.f32.mrf.mxu3 }
  0xcc   : > { %v562_v39 = vadd.f32 %v518_v37, %v406_v32  ;;  %v407_v40 = vpop.f32.mrf.mxu1  ;;  %v859_v32 = vpack.c.bf16 %v1673_v23, %v1672_v22 }
  0xcd   : > { %v408_v41 = vadd.f32 %v407_v40, %v324_v58  ;;  %v1119_v58 = vpack.c.bf16 %v1727_v50, %v1726_v49  ;;  %v1758_v40 = vld [vmem:[%s1947_s9 + $0x7e] sm:$0xff] }
  0xce   : > { %v692_v42 = vadd.f32 %v648_v20, %v562_v39  ;;  %v2146_v54 = vpop.f32.mrf.mxu0 }
  0xd0   : > { %v2141_v47 = vadd.f32 %v778_v2, %v692_v42  ;;  %v1755_v2 = vld [vmem:[%s1947_s9 + $0x66] sm:$0xff] }
  0xd1   : > { %v1250_v8 = vpack.c.bf16 %v1756_v7, %v1755_v2 }
  0xd3   : > { %v520_v55 = vpop.f32.mrf.mxu2  ;;  %v655_v57 = vpop.f32.mrf.mxu3 }
  0xd4   : > { %v563_v60 = vadd.f32 %v520_v55, %v408_v41  ;;  %v410_v63 = vpop.f32.mrf.mxu1  ;;  %v1701_v55 = vld [vmem:[%s1947_s9 + $0x64] sm:$0xff] }
  0xd5   : > { %v411_v1 = vadd.f32 %v410_v63, %v2064_v45 }
  0xd6   : > { %v693_v6 = vadd.f32 %v650_v28, %v563_v60  ;;  %v2160_v45 = vpop.f32.mrf.mxu0  ;;  %v1728_v28 = vld [vmem:[%s1947_s9 + $0x65] sm:$0xff]  ;;  %v1731_v60 = vld [vmem:[%s1947_s9 + $0x7d] sm:$0xff] }
  0xd7   : > { %1688 = vmatmul.msk.bf16.vlgmr.msra.gmra.mxu1 %vm281_vm1, %v858_v56  ;;  %v1120_v37 = vpack.c.bf16 %v1729_v29, %v1728_v28  ;;  %v1704_v29 = vld [vmem:[%s1947_s9 + $0x7c] sm:$0xff] }
  0xd8   : > { %1715 = vmatmul.msk.bf16.vlgmr.msra.gmra.mxu2 %vm281_vm1, %v2148_v0  ;;  %1743 = vmatmul.msk.bf16.gmra.mxu3 %vm281_vm1, %v1119_v58  ;;  %v2158_v11 = vadd.f32 %v2103_v9, %v693_v6  ;;  %v1700_v9 = vld [vmem:[%s1947_s9 + $0x5c] sm:$0xff] }
  0xd9   : > { %1771 = vmatmul.msk.bf16.gmra.mxu0 %vm281_vm1, %v1250_v8 }
  0xdb   : > { %v523_v12 = vpop.f32.mrf.mxu2  ;;  %v658_v14 = vpop.f32.mrf.mxu3 }
  0xdc   : > { %v564_v15 = vadd.f32 %v523_v12, %v411_v1  ;;  %v412_v16 = vpop.f32.mrf.mxu1 }
  0xdd   : > { %v413_v17 = vadd.f32 %v412_v16, %v2076_v53  ;;  %v989_v53 = vpack.c.bf16 %v1700_v9, %v1699_v24  ;;  %v1703_v9 = vld [vmem:[%s1947_s9 + $0x74] sm:$0xff] }
  0xde   : > { %v694_v20 = vadd.f32 %v653_v38, %v564_v15  ;;  %v2173_v30 = vpop.f32.mrf.mxu0 }
  0xe0   : > { %v2168_v27 = vadd.f32 %v2114_v18, %v694_v20  ;;  %v1757_v18 = vld [vmem:[%s1947_s9 + $0x76] sm:$0xff] }
  0xe1   : > { %v1251_v41 = vpack.c.bf16 %v1758_v40, %v1757_v18  ;;  %v1762_v40 = vld [vmem:[%s1947_s9 + $0x9e] sm:$0xff] }
  0xe3   : > { %v525_v31 = vpop.f32.mrf.mxu2  ;;  %v660_v33 = vpop.f32.mrf.mxu3 }
  0xe4   : > { %v565_v34 = vadd.f32 %v525_v31, %v413_v17  ;;  %v415_v35 = vpop.f32.mrf.mxu1  ;;  %v1733_v31 = vld [vmem:[%s1947_s9 + $0x8d] sm:$0xff] }
  0xe5   : > { %v416_v38 = vadd.f32 %v415_v35, %v2087_v62 }
  0xe6   : > { %v695_v39 = vadd.f32 %v655_v57, %v565_v34  ;;  %v2184_v43 = vpop.f32.mrf.mxu0  ;;  %v1702_v57 = vld [vmem:[%s1947_s9 + $0x6c] sm:$0xff] }
  0xe7   : > { %1689 = vmatmul.msk.bf16.gmra.mxu1 %vm281_vm1, %v859_v32  ;;  %v990_v7 = vpack.c.bf16 %v1702_v57, %v1701_v55  ;;  %v1705_v55 = vld [vmem:[%s1947_s9 + $0x84] sm:$0xff] }
  0xe8   : > { %1716 = vmatmul.msk.bf16.gmra.mxu2 %vm281_vm1, %v989_v53  ;;  %1744 = vmatmul.msk.bf16.gmra.mxu3 %vm281_vm1, %v1120_v37  ;;  %v2182_v42 = vadd.f32 %v2124_v25, %v695_v39  ;;  %v1730_v25 = vld [vmem:[%s1947_s9 + $0x75] sm:$0xff] }
  0xe9   : > { %1772 = vmatmul.msk.bf16.gmra.mxu0 %vm281_vm1, %v1251_v41  ;;  %v1121_v8 = vpack.c.bf16 %v1731_v60, %v1730_v25  ;;  %v1706_v25 = vld [vmem:[%s1947_s9 + $0x8c] sm:$0xff]  ;;  %v1735_v60 = vld [vmem:[%s1947_s9 + $0x9d] sm:$0xff] }
  0xeb   : > { %v528_v62 = vpop.f32.mrf.mxu2  ;;  %v663_v44 = vpop.f32.mrf.mxu3 }
  0xec   : > { %v566_v46 = vadd.f32 %v528_v62, %v416_v38  ;;  %v417_v48 = vpop.f32.mrf.mxu1  ;;  %v991_v38 = vpack.c.bf16 %v1704_v29, %v1703_v9  ;;  %v1707_v9 = vld [vmem:[%s1947_s9 + $0x94] sm:$0xff] }
  0xed   : > { %v418_v49 = vadd.f32 %v417_v48, %v2097_v5 }
  0xee   : > { %v696_v50 = vadd.f32 %v658_v14, %v566_v46  ;;  %v2195_v63 = vpop.f32.mrf.mxu0  ;;  %v1760_v14 = vld [vmem:[%s1947_s9 + $0x8e] sm:$0xff] }
  0xf0   : > { %v2190_v56 = vadd.f32 %v2135_v36, %v696_v50  ;;  %v1759_v36 = vld [vmem:[%s1947_s9 + $0x86] sm:$0xff] }
  0xf1   : > { %v1252_v15 = vpack.c.bf16 %v1760_v14, %v1759_v36  ;;  %v1763_v14 = vld [vmem:[%s1947_s9 + $0xa6] sm:$0xff] }
  0xf3   : > { %v530_v58 = vpop.f32.mrf.mxu2  ;;  %v665_v1 = vpop.f32.mrf.mxu3 }
  0xf4   : > { %v567_v6 = vadd.f32 %v530_v58, %v418_v49  ;;  %v420_v2 = vpop.f32.mrf.mxu1 }
  0xf5   : > { %v421_v5 = vadd.f32 %v420_v2, %v2107_v13 }
  0xf6   : > { %v697_v12 = vadd.f32 %v660_v33, %v567_v6  ;;  %v2207_v17 = vpop.f32.mrf.mxu0 }
  0xf7   : > { %1690 = vmatmul.msk.bf16.gmra.mxu1 %vm281_vm1, %v2148_v0 }
  0xf8   : > { %1717 = vmatmul.msk.bf16.gmra.mxu2 %vm281_vm1, %v990_v7  ;;  %1745 = vmatmul.msk.bf16.gmra.mxu3 %vm281_vm1, %v1121_v8  ;;  %v2205_v16 = vadd.f32 %v2146_v54, %v697_v12  ;;  %v1732_v54 = vld [vmem:[%s1947_s9 + $0x85] sm:$0xff] }
  0xf9   : > { %1773 = vmatmul.msk.bf16.gmra.mxu0 %vm281_vm1, %v1252_v15  ;;  %v1122_v39 = vpack.c.bf16 %v1733_v31, %v1732_v54  ;;  %v1708_v54 = vld [vmem:[%s1947_s9 + $0x9c] sm:$0xff]  ;;  %v1737_v31 = vld [vmem:[%s1947_s9 + $0xad] sm:$0xff] }
  0xfb   : > { %v533_v13 = vpop.f32.mrf.mxu2  ;;  %v668_v20 = vpop.f32.mrf.mxu3 }
  0xfc   : > { %v568_v22 = vadd.f32 %v533_v13, %v421_v5  ;;  %v422_v23 = vpop.f32.mrf.mxu1  ;;  %v992_v5 = vpack.c.bf16 %v1706_v25, %v1705_v55  ;;  %v1709_v25 = vld [vmem:[%s1947_s9 + $0xa4] sm:$0xff] }
  0xfd   : > { %v423_v0 = vadd.f32 %v422_v23, %v2118_v21  ;;  %v1761_v21 = vld [vmem:[%s1947_s9 + $0x96] sm:$0xff] }
  0xfe   : > { %v698_v24 = vadd.f32 %v663_v44, %v568_v22  ;;  %v2218_v32 = vpop.f32.mrf.mxu0 }
 0x100   : > { %v2213_v28 = vadd.f32 %v2160_v45, %v698_v24  ;;  %v1253_v45 = vpack.c.bf16 %v1762_v40, %v1761_v21 }
 0x103   : > { %v535_v33 = vpop.f32.mrf.mxu2  ;;  %v670_v34 = vpop.f32.mrf.mxu3 }
 0x104   : > { %v569_v35 = vadd.f32 %v535_v33, %v423_v0  ;;  %v425_v37 = vpop.f32.mrf.mxu1 }
 0x105   : > { %v426_v44 = vadd.f32 %v425_v37, %v2072_v51 }
 0x106   : > { %v699_v18 = vadd.f32 %v665_v1, %v569_v35  ;;  %v2228_v62 = vpop.f32.mrf.mxu0 }
 0x107   : > { %1691 = vmatmul.msk.bf16.gmra.mxu1 %vm281_vm1, %v989_v53 }
 0x108   : > { %1718 = vmatmul.msk.bf16.gmra.mxu2 %vm281_vm1, %v991_v38  ;;  %1746 = vmatmul.msk.bf16.gmra.mxu3 %vm281_vm1, %v1122_v39  ;;  %v2226_v41 = vadd.f32 %v2173_v30, %v699_v18  ;;  %v1734_v30 = vld [vmem:[%s1947_s9 + $0x95] sm:$0xff]  ;;  %v993_v18 = vpack.c.bf16 %v1708_v54, %v1707_v9 }
 0x109   : > { %1774 = vmatmul.msk.bf16.gmra.mxu0 %vm281_vm1, %v1253_v45  ;;  %v1123_v12 = vpack.c.bf16 %v1735_v60, %v1734_v30  ;;  %v1765_v45 = vld [vmem:[%s1947_s9 + $0xb6] sm:$0xff]  ;;  %v1710_v60 = vld [vmem:[%s1947_s9 + $0xac] sm:$0xff] }
 0x10a   : > { %v1711_v54 = vld [vmem:[%s1947_s9 + $0xb4] sm:$0xff] }
 0x10b   : > { %v538_v46 = vpop.f32.mrf.mxu2  ;;  %v673_v48 = vpop.f32.mrf.mxu3 }
 0x10c   : > { %v570_v53 = vadd.f32 %v538_v46, %v426_v44  ;;  %v427_v49 = vpop.f32.mrf.mxu1 }
 0x10d   : > { %v428_v51 = vadd.f32 %v427_v49, %v2083_v59 }
 0x10e   : > { %v700_v50 = vadd.f32 %v668_v20, %v570_v53  ;;  %v2239_v58 = vpop.f32.mrf.mxu0 }
 0x110   : > { %v2234_v57 = vadd.f32 %v2184_v43, %v700_v50  ;;  %v1764_v43 = vld [vmem:[%s1947_s9 + $0xae] sm:$0xff] }
 0x111   : > { %v1254_v59 = vpack.c.bf16 %v1764_v43, %v1763_v14 }
 0x113   : > { %v540_v1 = vpop.f32.mrf.mxu2  ;;  %v675_v6 = vpop.f32.mrf.mxu3 }
 0x114   : > { %v571_v2 = vadd.f32 %v540_v1, %v428_v51  ;;  %v430_v8 = vpop.f32.mrf.mxu1  ;;  %v1738_v51 = vld [vmem:[%s1947_s9 + $0xb5] sm:$0xff]  ;;  %v1739_v1 = vld [vmem:[%s1947_s9 + $0xbd] sm:$0xff] }
 0x115   : > { %v431_v20 = vadd.f32 %v430_v8, %v2093_v3  ;;  %v1125_v14 = vpack.c.bf16 %v1739_v1, %v1738_v51 }
 0x116   : > { %v701_v36 = vadd.f32 %v670_v34, %v571_v2  ;;  %v2250_v13 = vpop.f32.mrf.mxu0 }
 0x117   : > { %1692 = vmatmul.msk.bf16.gmra.mxu1 %vm281_vm1, %v990_v7 }
 0x118   : > { %1719 = vmatmul.msk.bf16.gmra.mxu2 %vm281_vm1, %v992_v5  ;;  %1747 = vmatmul.msk.bf16.gmra.mxu3 %vm281_vm1, %v1123_v12  ;;  %v2248_v15 = vadd.f32 %v2195_v63, %v701_v36  ;;  %v1736_v63 = vld [vmem:[%s1947_s9 + $0xa5] sm:$0xff]  ;;  %v994_v36 = vpack.c.bf16 %v1710_v60, %v1709_v25  ;;  %v866_v60 = vpack.c.bf16 %v1709_v25, %v1709_v25 }
 0x119   : > { %1775 = vmatmul.msk.bf16.gmra.mxu0 %vm281_vm1, %v1254_v59  ;;  %v1124_v21 = vpack.c.bf16 %v1737_v31, %v1736_v63  ;;  %v1767_v59 = vld [vmem:[%s1947_s9 + $0xc6] sm:$0xff]  ;;  %v1712_v63 = vld [vmem:[%s1947_s9 + $0xbc] sm:$0xff] }
 0x11a   : > { %v1740_v31 = vld [vmem:[%s1947_s9 + $0xc5] sm:$0xff] }
 0x11b   : > { %v543_v22 = vpop.f32.mrf.mxu2  ;;  %v678_v23 = vpop.f32.mrf.mxu3 }
 0x11c   : > { %v572_v7 = vadd.f32 %v543_v22, %v431_v20  ;;  %v432_v0 = vpop.f32.mrf.mxu1 }
 0x11d   : > { %v433_v3 = vadd.f32 %v432_v0, %v2105_v10 }
 0x11e   : > { %v702_v24 = vadd.f32 %v673_v48, %v572_v7  ;;  %v2261_v33 = vpop.f32.mrf.mxu0 }
 0x120   : > { %v2256_v29 = vadd.f32 %v2207_v17, %v702_v24  ;;  %v1766_v17 = vld [vmem:[%s1947_s9 + $0xbe] sm:$0xff] }
 0x121   : > { %v1255_v10 = vpack.c.bf16 %v1766_v17, %v1765_v45 }
 0x123   : > { %v545_v34 = vpop.f32.mrf.mxu2  ;;  %v680_v35 = vpop.f32.mrf.mxu3 }
 0x124   : > { %v573_v37 = vadd.f32 %v545_v34, %v433_v3  ;;  %v435_v39 = vpop.f32.mrf.mxu1 }
 0x125   : > { %v436_v48 = vadd.f32 %v435_v39, %v2116_v19  ;;  %v995_v39 = vpack.c.bf16 %v1712_v63, %v1711_v54 }
 0x126   : > { %v703_v40 = vadd.f32 %v675_v6, %v573_v37  ;;  %v818_v46 = vpop.f32.mrf.mxu0 }
 0x127   : > { %1693 = vmatmul.msk.bf16.gmra.mxu1 %vm281_vm1, %v991_v38 }
 0x128   : > { %1720 = vmatmul.msk.bf16.gmra.mxu2 %vm281_vm1, %v993_v18  ;;  %1748 = vmatmul.msk.bf16.gmra.mxu3 %vm281_vm1, %v1124_v21  ;;  %v2270_v44 = vadd.f32 %v2218_v32, %v703_v40  ;;  %v1126_v21 = vpack.c.bf16 %v1740_v31, %v1740_v31 }
 0x129   : > { %1776 = vmatmul.msk.bf16.gmra.mxu0 %vm281_vm1, %v1255_v10 }
 0x12b   : > { %v548_v53 = vpop.f32.mrf.mxu2  ;;  %v683_v49 = vpop.f32.mrf.mxu3 }
 0x12c   : > { %v574_v50 = vadd.f32 %v548_v53, %v436_v48  ;;  %v437_v38 = vpop.f32.mrf.mxu1 }
 0x12d   : > { %v438_v6 = vadd.f32 %v437_v38, %v2126_v26 }
 0x12e   : > { %v704_v55 = vadd.f32 %v678_v23, %v574_v50  ;;  %v820_v32 = vpop.f32.mrf.mxu0 }
 0x130   : > { %v2276_v30 = vadd.f32 %v2228_v62, %v704_v55  ;;  %v1256_v62 = vpack.c.bf16 %v1767_v59, %v1767_v59 }
 0x133   : > { %v550_v2 = vpop.f32.mrf.mxu2  ;;  %v685_v19 = vpop.f32.mrf.mxu3 }
 0x134   : > { %v575_v8 = vadd.f32 %v550_v2, %v438_v6  ;;  %v440_v12 = vpop.f32.mrf.mxu1 }
 0x135   : > { %v441_v22 = vadd.f32 %v440_v12, %v2074_v52 }
 0x136   : > { %v705_v43 = vadd.f32 %v680_v35, %v575_v8  ;;  %v1298_v20 = vpop.f32.mrf.mxu0  ;;  %v2318_v8 = vld [vmem:[%s2432_s2] ss:$0 sm:$0xff] }
 0x137   : > { %1694 = vmatmul.msk.bf16.gmra.mxu1 %vm281_vm1, %v992_v5 }
 0x138   : > { %1721 = vmatmul.msk.bf16.gmra.mxu2 %vm281_vm1, %v994_v36  ;;  %1749 = vmatmul.msk.bf16.gmra.mxu3 %vm281_vm1, %v1125_v14  ;;  %v2287_v26 = vadd.f32 %v2239_v58, %v705_v43  ;;  %v2323_v36 = vld [vmem:[%s2433_s3] ss:$0 sm:$0xff] }
 0x139   : > { %1777 = vmatmul.msk.bf16.gmra.mxu0 %vm281_vm1, %v1256_v62 }
 0x13b   : > { %v553_v23 = vpop.f32.mrf.mxu2  ;;  %v688_v7 = vpop.f32.mrf.mxu3 }
 0x13c   : > { %v576_v0 = vadd.f32 %v553_v23, %v441_v22  ;;  %v442_v24 = vpop.f32.mrf.mxu1 }
 0x13d   : > { %v443_v58 = vadd.f32 %v442_v24, %v2085_v61 }
 0x13e   : > { %v706_v5 = vadd.f32 %v683_v49, %v576_v0  ;;  %v1300_v3 = vpop.f32.mrf.mxu0 }
 0x140   : > { %v2292_v9 = vadd.f32 %v2250_v13, %v706_v5 }
 0x143   : > { %v555_v34 = vpop.f32.mrf.mxu2  ;;  %v690_v35 = vpop.f32.mrf.mxu3 }
 0x144   : > { %v577_v37 = vadd.f32 %v555_v34, %v443_v58  ;;  %v445_v52 = vpop.f32.mrf.mxu1 }
 0x145   : > { %v446_v61 = vadd.f32 %v445_v52, %v2095_v4 }
 0x146   : > { %v707_v40 = vadd.f32 %v685_v19, %v577_v37  ;;  %v1303_v45 = vpop.f32.mrf.mxu0 }
 0x147   : > { %1695 = vmatmul.msk.bf16.gmra.mxu1 %vm281_vm1, %v993_v18  ;;  %v1713_v18 = vld [vmem:[%s1947_s9 + $0xc4] sm:$0xff]  ;;  %s2331_s9 = scalar_lea.vmem %s2434_s4, %s1552_s16 }
 0x148   : > { %1722 = vmatmul.msk.bf16.gmra.mxu2 %vm281_vm1, %v995_v39  ;;  %1750 = vmatmul.msk.bf16.gmra.mxu3 %vm281_vm1, %v1126_v21  ;;  %v2302_v13 = vadd.f32 %v2261_v33, %v707_v40  ;;  %v996_v33 = vpack.c.bf16 %v1713_v18, %v1713_v18 }
 0x14b   : > { %v558_v17 = vpop.f32.mrf.mxu2  ;;  %v1168_v10 = vpop.f32.mrf.mxu3 }
 0x14c   : > { %v578_v48 = vadd.f32 %v558_v17, %v446_v61  ;;  %v447_v53 = vpop.f32.mrf.mxu1 }
 0x14e   : > { %v708_v49 = vadd.f32 %v688_v7, %v578_v48  ;;  %v1305_v38 = vpop.f32.mrf.mxu0 }
 0x150   : > { %v2305_v50 = vadd.f32 %v818_v46, %v708_v49 }
 0x153   : > { %v560_v55 = vpop.f32.mrf.mxu2  ;;  %v1170_v51 = vpop.f32.mrf.mxu3 }
 0x154   : > { %v908_v1 = vpop.f32.mrf.mxu1 }
 0x155   : > { %v952_v32 = vadd.f32 %v908_v1, %v2141_v47 }
 0x156   : > { %v2311_v4 = vpop.f32.mrf.mxu0 }
 0x157   : > { %1696 = vmatmul.msk.bf16.gmra.mxu1 %vm281_vm1, %v866_v60 }
 0x158   : > { %1723 = vmatmul.msk.bf16.gmra.mxu2 %vm281_vm1, %v996_v33 }
 0x15b   : > { %v1038_v46 = vpop.f32.mrf.mxu2  ;;  %v1173_v6 = vpop.f32.mrf.mxu3 }
 0x15c   : > { %v1082_v2 = vadd.f32 %v1038_v46, %v952_v32  ;;  %v910_v19 = vpop.f32.mrf.mxu1 }
 0x15d   : > { %v953_v43 = vadd.f32 %v910_v19, %v2158_v11 }
 0x15e   : > { %v1212_v25 = vadd.f32 %v1168_v10, %v1082_v2  ;;  %v1310_v47 = vpop.f32.mrf.mxu0 }
 0x160   : > { %v1342_v12 = vadd.f32 %v1298_v20, %v1212_v25 }
 0x162   : > { %v1363_v14 = vmul.f32 %v2318_v8, %v1342_v12 }
 0x163   : > { %v1040_v59 = vpop.f32.mrf.mxu2  ;;  %v1175_v62 = vpop.f32.mrf.mxu3 }
 0x164   : > { %v1384_v22 = vadd.f32 %v2323_v36, %v1363_v14  ;;  %v1083_v23 = vadd.f32 %v1040_v59, %v953_v43  ;;  %v913_v7 = vpop.f32.mrf.mxu1 }
 0x165   : > { %v954_v54 = vadd.f32 %v913_v7, %v2168_v27 }
 0x166   : > { %v1401_v20 = vmax.f32 %v1384_v22, 0.0  ;;  %v1213_v0 = vadd.f32 %v1170_v51, %v1083_v23  ;;  %v1313_v11 = vpop.f32.mrf.mxu0 }
 0x168   : > { %1419 = vst.msk [vmem:[%s2331_s9] sm:$0xff] %vm1418_vm2, %v1401_v20  ;;  %v1343_v24 = vadd.f32 %v1300_v3, %v1213_v0 }
 0x16a   : > { %v1364_v5 = vmul.f32 %v2318_v8, %v1343_v24 }
 0x16b   : > { %v1043_v63 = vpop.f32.mrf.mxu2  ;;  %v1178_v31 = vpop.f32.mrf.mxu3 }
 0x16c   : > { %v1385_v58 = vadd.f32 %v2323_v36, %v1364_v5  ;;  %v1084_v34 = vadd.f32 %v1043_v63, %v954_v54  ;;  %v915_v35 = vpop.f32.mrf.mxu1 }
 0x16d   : > { %v955_v40 = vadd.f32 %v915_v35, %v2182_v42 }
 0x16e   : > { %v1402_v37 = vmax.f32 %v1385_v58, 0.0  ;;  %v1214_v52 = vadd.f32 %v1173_v6, %v1084_v34  ;;  %v1315_v21 = vpop.f32.mrf.mxu0 }
 0x170   : > { %1420 = vst.msk [vmem:[%s2331_s9 + $0x8] sm:$0xff] %vm1418_vm2, %v1402_v37  ;;  %v1344_v39 = vadd.f32 %v1303_v45, %v1214_v52 }
 0x172   : > { %v1365_v3 = vmul.f32 %v2318_v8, %v1344_v39 }
 0x173   : > { %v1045_v61 = vpop.f32.mrf.mxu2  ;;  %v1180_v17 = vpop.f32.mrf.mxu3 }
 0x174   : > { %v1386_v27 = vadd.f32 %v2323_v36, %v1365_v3  ;;  %v1085_v10 = vadd.f32 %v1045_v61, %v955_v40  ;;  %v918_v48 = vpop.f32.mrf.mxu1 }
 0x175   : > { %v956_v60 = vadd.f32 %v918_v48, %v2190_v56 }
 0x176   : > { %v1403_v53 = vmax.f32 %v1386_v27, 0.0  ;;  %v1215_v49 = vadd.f32 %v1175_v62, %v1085_v10  ;;  %v1318_v55 = vpop.f32.mrf.mxu0 }
 0x178   : > { %1421 = vst.msk [vmem:[%s2331_s9 + $0x10] sm:$0xff] %vm1418_vm2, %v1403_v53  ;;  %v1345_v18 = vadd.f32 %v1305_v38, %v1215_v49 }
 0x17a   : > { %v1366_v45 = vmul.f32 %v2318_v8, %v1345_v18 }
 0x17b   : > { %v1048_v51 = vpop.f32.mrf.mxu2  ;;  %v1183_v1 = vpop.f32.mrf.mxu3 }
 0x17c   : > { %v1387_v42 = vadd.f32 %v2323_v36, %v1366_v45  ;;  %v1086_v33 = vadd.f32 %v1048_v51, %v956_v60  ;;  %v920_v32 = vpop.f32.mrf.mxu1 }
 0x17d   : > { %v957_v25 = vadd.f32 %v920_v32, %v2205_v16 }
 0x17e   : > { %v1404_v46 = vmax.f32 %v1387_v42, 0.0  ;;  %v1216_v6 = vadd.f32 %v1178_v31, %v1086_v33  ;;  %v1320_v19 = vpop.f32.mrf.mxu0 }
 0x180   : > { %1422 = vst.msk [vmem:[%s2331_s9 + $0x18] sm:$0xff] %vm1418_vm2, %v1404_v46  ;;  %v1346_v2 = vadd.f32 %v2311_v4, %v1216_v6 }
 0x182   : > { %v1367_v38 = vmul.f32 %v2318_v8, %v1346_v2 }
 0x183   : > { %v1050_v12 = vpop.f32.mrf.mxu2  ;;  %v1185_v56 = vpop.f32.mrf.mxu3 }
 0x184   : > { %v1388_v14 = vadd.f32 %v2323_v36, %v1367_v38  ;;  %v1087_v43 = vadd.f32 %v1050_v12, %v957_v25  ;;  %v923_v59 = vpop.f32.mrf.mxu1 }
 0x185   : > { %v958_v20 = vadd.f32 %v923_v59, %v2213_v28 }
 0x186   : > { %v1405_v62 = vmax.f32 %v1388_v14, 0.0  ;;  %v1217_v22 = vadd.f32 %v1180_v17, %v1087_v43  ;;  %v1323_v7 = vpop.f32.mrf.mxu0 }
 0x188   : > { %1423 = vst.msk [vmem:[%s2331_s9 + $0x20] sm:$0xff] %vm1418_vm2, %v1405_v62  ;;  %v1347_v23 = vadd.f32 %v1310_v47, %v1217_v22 }
 0x18a   : > { %v1368_v4 = vmul.f32 %v2318_v8, %v1347_v23 }
 0x18b   : > { %v1053_v0 = vpop.f32.mrf.mxu2  ;;  %v1188_v24 = vpop.f32.mrf.mxu3 }
 0x18c   : > { %v1389_v16 = vadd.f32 %v2323_v36, %v1368_v4  ;;  %v1088_v5 = vadd.f32 %v1053_v0, %v958_v20  ;;  %v925_v54 = vpop.f32.mrf.mxu1 }
 0x18d   : > { %v959_v35 = vadd.f32 %v925_v54, %v2226_v41 }
 0x18e   : > { %v1406_v63 = vmax.f32 %v1389_v16, 0.0  ;;  %v1218_v31 = vadd.f32 %v1183_v1, %v1088_v5  ;;  %v1325_v34 = vpop.f32.mrf.mxu0 }
 0x190   : > { %1424 = vst.msk [vmem:[%s2331_s9 + $0x28] sm:$0xff] %vm1418_vm2, %v1406_v63  ;;  %v1348_v58 = vadd.f32 %v1313_v11, %v1218_v31 }
 0x192   : > { %v1369_v47 = vmul.f32 %v2318_v8, %v1348_v58 }
 0x193   : > { %v1055_v37 = vpop.f32.mrf.mxu2  ;;  %v1190_v52 = vpop.f32.mrf.mxu3 }
 0x194   : > { %v1390_v28 = vadd.f32 %v2323_v36, %v1369_v47  ;;  %v1089_v39 = vadd.f32 %v1055_v37, %v959_v35  ;;  %v928_v3 = vpop.f32.mrf.mxu1 }
 0x195   : > { %v960_v10 = vadd.f32 %v928_v3, %v2234_v57 }
 0x196   : > { %v1407_v40 = vmax.f32 %v1390_v28, 0.0  ;;  %v1219_v61 = vadd.f32 %v1185_v56, %v1089_v39  ;;  %v1328_v27 = vpop.f32.mrf.mxu0 }
 0x198   : > { %1425 = vst.msk [vmem:[%s2331_s9 + $0x30] sm:$0xff] %vm1418_vm2, %v1407_v40  ;;  %v1349_v17 = vadd.f32 %v1315_v21, %v1219_v61 }
 0x19a   : > { %v1370_v11 = vmul.f32 %v2318_v8, %v1349_v17 }
 0x19b   : > { %v1058_v48 = vpop.f32.mrf.mxu2  ;;  %v1193_v53 = vpop.f32.mrf.mxu3 }
 0x19c   : > { %v1391_v41 = vadd.f32 %v2323_v36, %v1370_v11  ;;  %v1090_v49 = vadd.f32 %v1058_v48, %v960_v10  ;;  %v930_v18 = vpop.f32.mrf.mxu1 }
 0x19d   : > { %v961_v42 = vadd.f32 %v930_v18, %v2248_v15 }
 0x19e   : > { %v1408_v45 = vmax.f32 %v1391_v41, 0.0  ;;  %v1220_v60 = vadd.f32 %v1188_v24, %v1090_v49  ;;  %v1330_v1 = vpop.f32.mrf.mxu0 }
 0x1a0   : > { %1426 = vst.msk [vmem:[%s2331_s9 + $0x38] sm:$0xff] %vm1418_vm2, %v1408_v45  ;;  %v1350_v51 = vadd.f32 %v1318_v55, %v1220_v60 }
 0x1a2   : > { %v1371_v21 = vmul.f32 %v2318_v8, %v1350_v51 }
 0x1a3   : > { %v1060_v33 = vpop.f32.mrf.mxu2  ;;  %v1195_v32 = vpop.f32.mrf.mxu3 }
 0x1a4   : > { %v1392_v57 = vadd.f32 %v2323_v36, %v1371_v21  ;;  %v1091_v46 = vadd.f32 %v1060_v33, %v961_v42  ;;  %v933_v6 = vpop.f32.mrf.mxu1 }
 0x1a5   : > { %v962_v56 = vadd.f32 %v933_v6, %v2256_v29 }
 0x1a6   : > { %v1409_v2 = vmax.f32 %v1392_v57, 0.0  ;;  %v1221_v38 = vadd.f32 %v1190_v52, %v1091_v46  ;;  %v1333_v12 = vpop.f32.mrf.mxu0 }
 0x1a8   : > { %1427 = vst.msk [vmem:[%s2331_s9 + $0x40] sm:$0xff] %vm1418_vm2, %v1409_v2  ;;  %v1351_v25 = vadd.f32 %v1320_v19, %v1221_v38 }
 0x1aa   : > { %v1372_v55 = vmul.f32 %v2318_v8, %v1351_v25 }
 0x1ab   : > { %v1063_v14 = vpop.f32.mrf.mxu2  ;;  %v1198_v43 = vpop.f32.mrf.mxu3 }
 0x1ac   : > { %v1393_v15 = vadd.f32 %v2323_v36, %v1372_v55  ;;  %v1092_v59 = vadd.f32 %v1063_v14, %v962_v56  ;;  %v935_v62 = vpop.f32.mrf.mxu1 }
 0x1ad   : > { %v963_v0 = vadd.f32 %v935_v62, %v2270_v44 }
 0x1ae   : > { %v1410_v22 = vmax.f32 %v1393_v15, 0.0  ;;  %v1222_v23 = vadd.f32 %v1193_v53, %v1092_v59  ;;  %v1335_v20 = vpop.f32.mrf.mxu0 }
 0x1b0   : > { %1428 = vst.msk [vmem:[%s2331_s9 + $0x48] sm:$0xff] %vm1418_vm2, %v1410_v22  ;;  %v1352_v4 = vadd.f32 %v1323_v7, %v1222_v23 }
 0x1b2   : > { %v1373_v19 = vmul.f32 %v2318_v8, %v1352_v4 }
 0x1b3   : > { %v1065_v24 = vpop.f32.mrf.mxu2  ;;  %v1200_v16 = vpop.f32.mrf.mxu3 }
 0x1b4   : > { %v1394_v29 = vadd.f32 %v2323_v36, %v1373_v19  ;;  %v1093_v5 = vadd.f32 %v1065_v24, %v963_v0  ;;  %v938_v54 = vpop.f32.mrf.mxu1 }
 0x1b5   : > { %v964_v35 = vadd.f32 %v938_v54, %v2276_v30 }
 0x1b6   : > { %v1411_v63 = vmax.f32 %v1394_v29, 0.0  ;;  %v1223_v31 = vadd.f32 %v1195_v32, %v1093_v5  ;;  %v1338_v47 = vpop.f32.mrf.mxu0 }
 0x1b8   : > { %1429 = vst.msk [vmem:[%s2331_s9 + $0x50] sm:$0xff] %vm1418_vm2, %v1411_v63  ;;  %v1353_v58 = vadd.f32 %v1325_v34, %v1223_v31 }
 0x1ba   : > { %v1374_v7 = vmul.f32 %v2318_v8, %v1353_v58 }
 0x1bb   : > { %v1068_v37 = vpop.f32.mrf.mxu2  ;;  %v1203_v52 = vpop.f32.mrf.mxu3 }
 0x1bc   : > { %v1395_v44 = vadd.f32 %v2323_v36, %v1374_v7  ;;  %v1094_v28 = vadd.f32 %v1068_v37, %v964_v35  ;;  %v940_v39 = vpop.f32.mrf.mxu1 }
 0x1bd   : > { %v965_v11 = vadd.f32 %v940_v39, %v2287_v26 }
 0x1be   : > { %v1412_v3 = vmax.f32 %v1395_v44, 0.0  ;;  %v1224_v40 = vadd.f32 %v1198_v43, %v1094_v28  ;;  %v1340_v17 = vpop.f32.mrf.mxu0 }
 0x1c0   : > { %1430 = vst.msk [vmem:[%s2331_s9 + $0x58] sm:$0xff] %vm1418_vm2, %v1412_v3  ;;  %v1354_v61 = vadd.f32 %v1328_v27, %v1224_v40 }
 0x1c2   : > { %v1375_v34 = vmul.f32 %v2318_v8, %v1354_v61 }
 0x1c3   : > { %v1070_v10 = vpop.f32.mrf.mxu2  ;;  %v1205_v48 = vpop.f32.mrf.mxu3 }
 0x1c4   : > { %v1396_v30 = vadd.f32 %v2323_v36, %v1375_v34  ;;  %v1095_v53 = vadd.f32 %v1070_v10, %v965_v11  ;;  %v943_v41 = vpop.f32.mrf.mxu1 }
 0x1c5   : > { %v966_v27 = vadd.f32 %v943_v41, %v2292_v9 }
 0x1c6   : > { %v1413_v49 = vmax.f32 %v1396_v30, 0.0  ;;  %v1225_v18 = vadd.f32 %v1200_v16, %v1095_v53 }
 0x1c8   : > { %1431 = vst.msk [vmem:[%s2331_s9 + $0x60] sm:$0xff] %vm1418_vm2, %v1413_v49  ;;  %v1355_v45 = vadd.f32 %v1330_v1, %v1225_v18 }
 0x1ca   : > { %v1376_v60 = vmul.f32 %v2318_v8, %v1355_v45 }
 0x1cb   : > { %v1073_v51 = vpop.f32.mrf.mxu2  ;;  %v1208_v21 = vpop.f32.mrf.mxu3 }
 0x1cc   : > { %v1397_v26 = vadd.f32 %v2323_v36, %v1376_v60  ;;  %v1096_v42 = vadd.f32 %v1073_v51, %v966_v27  ;;  %v945_v33 = vpop.f32.mrf.mxu1 }
 0x1cd   : > { %v967_v1 = vadd.f32 %v945_v33, %v2302_v13 }
 0x1ce   : > { %v1414_v32 = vmax.f32 %v1397_v26, 0.0  ;;  %v1226_v57 = vadd.f32 %v1203_v52, %v1096_v42 }
 0x1d0   : > { %1432 = vst.msk [vmem:[%s2331_s9 + $0x68] sm:$0xff] %vm1418_vm2, %v1414_v32  ;;  %v1356_v46 = vadd.f32 %v1333_v12, %v1226_v57 }
 0x1d2   : > { %v1377_v6 = vmul.f32 %v2318_v8, %v1356_v46 }
 0x1d3   : > { %v1075_v2 = vpop.f32.mrf.mxu2  ;;  %v1210_v38 = vpop.f32.mrf.mxu3 }
 0x1d4   : > { %v1398_v9 = vadd.f32 %v2323_v36, %v1377_v6  ;;  %v1097_v25 = vadd.f32 %v1075_v2, %v967_v1  ;;  %v948_v55 = vpop.f32.mrf.mxu1 }
 0x1d5   : > { %v968_v12 = vadd.f32 %v948_v55, %v2305_v50 }
 0x1d6   : > { %v1415_v56 = vmax.f32 %v1398_v9, 0.0  ;;  %v1227_v14 = vadd.f32 %v1205_v48, %v1097_v25 }
 0x1d8   : > { %1433 = vst.msk [vmem:[%s2331_s9 + $0x70] sm:$0xff] %vm1418_vm2, %v1415_v56  ;;  %v1357_v43 = vadd.f32 %v1335_v20, %v1227_v14 }
 0x1da   : > { %v1378_v15 = vmul.f32 %v2318_v8, %v1357_v43 }
 0x1db   : > { %v1078_v59 = vpop.f32.mrf.mxu2 }
 0x1dc   : > { %v1399_v13 = vadd.f32 %v2323_v36, %v1378_v15  ;;  %v1098_v62 = vadd.f32 %v1078_v59, %v968_v12  ;;  %v950_v22 = vpop.f32.mrf.mxu1 }
 0x1de   : > { %v1416_v23 = vmax.f32 %v1399_v13, 0.0  ;;  %v1228_v4 = vadd.f32 %v1208_v21, %v1098_v62 }
 0x1e0   : > { %1434 = vst.msk [vmem:[%s2331_s9 + $0x78] sm:$0xff] %vm1418_vm2, %v1416_v23  ;;  %v1358_v19 = vadd.f32 %v1338_v47, %v1228_v4 }
 0x1e2   : > { %v1379_v0 = vmul.f32 %v2318_v8, %v1358_v19 }
 0x1e3   : > { %v1080_v24 = vpop.f32.mrf.mxu2 }
 0x1e4   : > { %v1400_v16 = vadd.f32 %v2323_v36, %v1379_v0 }
 0x1e6   : > { %v1417_v20 = vmax.f32 %v1400_v16, 0.0 }
 0x1e8   : > { %1435 = vst.msk [vmem:[%s2331_s9 + $0x80] sm:$0xff] %vm1418_vm2, %v1417_v20 }
 0x1e9 PF: > { %s14_s19 = sadd.s32 1, %s1865_s19   ;;  %s2435_s15 = smov %s1857_s17 }
 0x1ea   : > { %p11_p7 = scmp.ge.s32.totalorder %s14_s19, 18   ;;  %s2436_s16 = smov %s1861_s18 }
 0x1eb   : > { %s2437_s17 = smov %s2440_s20  ;;  %s2438_s18 = smov %s2444_s21 }
 0x1ec   :  { %13 = sbr.rel (!%p11_p7) target bundleno = 3 (0x3), region = 83 }

</bundles_post_ra>
